<compile_context>
chip_gen: v7x
topology: tpu7x:2x2x1
jax: 0.10.0
libtpu: 0.0.40
codegen_flags: <defaults>
</compile_context>

<pallas_src>
import functools

import jax
import jax.numpy as jnp
from jax.experimental import pallas as pl
from jax.experimental.pallas import tpu as pltpu


def _gated_attention_kernel(n_ref, x_ref, wvu_ref, bvu_ref, ww_ref, bw_ref,
                            a_ref, *, norm: bool):
    i = pl.program_id(0)
    tn = x_ref.shape[0]
    d = ww_ref.shape[1]

    # ---- fused attention_V | attention_U projection: one (tn, L)@(L, 2D) pass.
    x = x_ref[...].astype(wvu_ref.dtype)          # optional bf16 cast (no-op in f32)
    h = jnp.dot(x, wvu_ref[...], preferred_element_type=jnp.float32)
    h = h + bvu_ref[...]
    av = jnp.tanh(h[:, :d])                       # attention_V branch
    au = jax.nn.sigmoid(h[:, d:])                 # attention_U branch
    gated = av * au                               # (tn, D), f32

    # ---- attention_weights (D -> K=1): elementwise mul + lane reduction.
    s = jnp.sum(gated * ww_ref[...], axis=-1, keepdims=True) + bw_ref[...]  # (tn, 1)

    start = pl.multiple_of(i * tn, tn)
    a_ref[pl.ds(start, tn), :] = s

    if norm:
        # ---- final grid step: masked, numerically stable softmax over instances.
        @pl.when(i == pl.num_programs(0) - 1)
        def _():
            n_valid = n_ref[0]
            scores = a_ref[...]                                     # (n_pad, 1)
            rows = jax.lax.broadcasted_iota(jnp.int32, scores.shape, 0)
            scores = jnp.where(rows < n_valid, scores, -jnp.inf)
            m = jnp.max(scores, axis=0, keepdims=True)
            e = jnp.exp(scores - m)
            a_ref[...] = e / jnp.sum(e, axis=0, keepdims=True)


@functools.partial(jax.jit, static_argnames=("tile_n", "weight_dtype", "norm"))
def gated_attention_forward(x, params, *, tile_n=128,
                            weight_dtype=jnp.float32, norm=True):
    """x: (N, L) float32 bag of instances. Returns A of shape (K=1, N)."""
    n, l = x.shape
    d, l_w = params["wv"].shape
    k = params["ww"].shape[0]
    assert l == l_w
    assert k == 1  # TODO(synk): K > 1 heads would need a (K, N) score layout.

    n_tiles = pl.cdiv(n, tile_n)
    n_pad = n_tiles * tile_n
    if n_pad != n:
        x = jnp.pad(x, ((0, n_pad - n), (0, 0)))

    # Fuse V|U weights into (L, 2D) so one matmul feeds both branches.
    wvu = jnp.concatenate([params["wv"].T, params["wu"].T], axis=1).astype(weight_dtype)
    bvu = jnp.concatenate([params["bv"], params["bu"]]).reshape(1, 2 * d).astype(jnp.float32)
    ww = params["ww"].astype(jnp.float32)                       # (1, D)
    bw = params["bw"].reshape(1, 1).astype(jnp.float32)         # (1, 1)
    n_scalar = jnp.array([n], jnp.int32)

    grid_spec = pltpu.PrefetchScalarGridSpec(
        num_scalar_prefetch=1,
        grid=(n_tiles,),
        in_specs=[
            pl.BlockSpec((tile_n, l), lambda i, n_s: (i, 0)),    # x: streamed
            pl.BlockSpec((l, 2 * d), lambda i, n_s: (0, 0)),     # fused W: resident
            pl.BlockSpec((1, 2 * d), lambda i, n_s: (0, 0)),     # fused b: resident
            pl.BlockSpec((1, d), lambda i, n_s: (0, 0)),         # Ww: resident
            pl.BlockSpec((1, 1), lambda i, n_s: (0, 0)),         # bw: resident
        ],
        out_specs=pl.BlockSpec((n_pad, 1), lambda i, n_s: (0, 0)),  # resident scores
    )

    w_itemsize = jnp.dtype(weight_dtype).itemsize
    cost = pl.CostEstimate(
        flops=2 * n_pad * l * (2 * d) + 3 * n_pad * d,
        transcendentals=n_pad * (2 * d + 1),
        bytes_accessed=(n_pad * l * 4 + l * 2 * d * w_itemsize
                        + 2 * d * 4 + d * 4 + 4 + n_pad * 4),
    )

    a_col = pl.pallas_call(
        functools.partial(_gated_attention_kernel, norm=norm),
        grid_spec=grid_spec,
        out_shape=jax.ShapeDtypeStruct((n_pad, 1), jnp.float32),
        compiler_params=pltpu.CompilerParams(
            dimension_semantics=("arbitrary",)),   # output block revisited each step
        cost_estimate=cost,
    )(n_scalar, x, wvu, bvu, ww, bw)

    return a_col[:n, :].T            # (K=1, N), matches torch.transpose(A, 1, 0)


def gated_attention_ref(x, params):
    """Plain-JAX replica of the PyTorch forward (isNorm=True)."""
    av = jnp.tanh(x @ params["wv"].T + params["bv"])
    au = jax.nn.sigmoid(x @ params["wu"].T + params["bu"])
    a = (av * au) @ params["ww"].T + params["bw"]    # (N, K)
    return jax.nn.softmax(a.T, axis=1)               # (K, N)


def init_params(key, L=512, D=128, K=1):
    """PyTorch-style Linear init: U(-1/sqrt(fan_in), 1/sqrt(fan_in))."""
    ks = jax.random.split(key, 3)

    def lin(k, fan_in, fan_out):
        bound = 1.0 / jnp.sqrt(jnp.float32(fan_in))
        kw, kb = jax.random.split(k)
        w = jax.random.uniform(kw, (fan_out, fan_in), jnp.float32, -bound, bound)
        b = jax.random.uniform(kb, (fan_out,), jnp.float32, -bound, bound)
        return w, b

    wv, bv = lin(ks[0], L, D)      # attention_V
    wu, bu = lin(ks[1], L, D)      # attention_U
    ww, bw = lin(ks[2], D, K)      # attention_weights
    return {"wv": wv, "bv": bv, "wu": wu, "bu": bu, "ww": ww, "bw": bw}


if __name__ == "__main__":
    L, D, K = 512, 128, 1
    N = 300                        # not a multiple of the tile -> exercises pad+mask
    key = jax.random.PRNGKey(0)
    kp, kx = jax.random.split(key)
    params = init_params(kp, L, D, K)
    x = jax.random.normal(kx, (N, L), jnp.float32)

    a_ref = gated_attention_ref(x, params)

    # f32 path: exact module semantics.
    a_f32 = gated_attention_forward(x, params, tile_n=128, weight_dtype=jnp.float32)
    jax.block_until_ready(a_f32)
    assert a_f32.shape == (K, N)
    assert jnp.allclose(a_f32, a_ref, rtol=2e-2, atol=1e-5)
    assert jnp.allclose(jnp.sum(a_f32, axis=1), 1.0, atol=1e-5)

    # bf16-weight path: halves the dominant weight DMA / doubles MXU throughput.
    a_bf16 = gated_attention_forward(x, params, tile_n=128, weight_dtype=jnp.bfloat16)
    jax.block_until_ready(a_bf16)
    assert a_bf16.shape == (K, N)
    assert jnp.allclose(a_bf16, a_ref, rtol=5e-2, atol=1e-4)

    print("KERNEL_OK")
</pallas_src>

<mosaic_0001>
module attributes {stable_mosaic.version = 11 : i64} {
  func.func @_gated_attention_kernel(%arg0: i32, %arg1: memref<1xi32, #tpu.memory_space<smem>>, %arg2: memref<128x512xf32, #tpu.memory_space<vmem>>, %arg3: memref<512x256xf32, #tpu.memory_space<vmem>>, %arg4: memref<1x256xf32, #tpu.memory_space<vmem>>, %arg5: memref<1x128xf32, #tpu.memory_space<vmem>>, %arg6: memref<1x1xf32, #tpu.memory_space<vmem>>, %arg7: memref<384x1xf32, #tpu.memory_space<vmem>>) attributes {dimension_semantics = [#tpu.dimension_semantics<arbitrary>], iteration_bounds = array<i64: 3>, scalar_prefetch = 1 : i64, scratch_operands = 0 : i64, tpu.core_type = #tpu.core_type<tc>, window_params = [{transform_indices = @transform_0, window_bounds = array<i64: 128, 512>}, {pipeline_mode = #tpu.pipeline_mode<synchronous>, transform_indices = @transform_1, window_bounds = array<i64: 512, 256>}, {pipeline_mode = #tpu.pipeline_mode<synchronous>, transform_indices = @transform_2, window_bounds = array<i64: 1, 256>}, {pipeline_mode = #tpu.pipeline_mode<synchronous>, transform_indices = @transform_3, window_bounds = array<i64: 1, 128>}, {pipeline_mode = #tpu.pipeline_mode<synchronous>, transform_indices = @transform_4, window_bounds = array<i64: 1, 1>}, {pipeline_mode = #tpu.pipeline_mode<synchronous>, transform_indices = @transform_5, window_bounds = array<i64: 384, 1>}]} {
    %c0 = arith.constant 0 : index
    %c0_0 = arith.constant 0 : index
    %0 = vector.load %arg2[%c0, %c0_0] : memref<128x512xf32, #tpu.memory_space<vmem>>, vector<128x512xf32>
    %c0_1 = arith.constant 0 : index
    %c0_2 = arith.constant 0 : index
    %1 = vector.load %arg3[%c0_1, %c0_2] : memref<512x256xf32, #tpu.memory_space<vmem>>, vector<512x256xf32>
    %cst = arith.constant dense<0.000000e+00> : vector<128x256xf32>
    %2 = tpu.matmul %0, %1, %cst {dimension_numbers = #tpu.dot_dimension_numbers<[1], [0], [0], [1], [0, 0, 1, 1], [], []>} : vector<128x512xf32>, vector<512x256xf32>, vector<128x256xf32> -> vector<128x256xf32>
    %c0_3 = arith.constant 0 : index
    %c0_4 = arith.constant 0 : index
    %3 = vector.load %arg4[%c0_3, %c0_4] : memref<1x256xf32, #tpu.memory_space<vmem>>, vector<1x256xf32>
    %4 = vector.broadcast %3 : vector<1x256xf32> to vector<128x256xf32>
    %5 = arith.addf %2, %4 : vector<128x256xf32>
    %6 = vector.extract_strided_slice %5 {offsets = [0, 0], sizes = [128, 128], strides = [1, 1]} : vector<128x256xf32> to vector<128x128xf32>
    %7 = math.tanh %6 : vector<128x128xf32>
    %8 = vector.extract_strided_slice %5 {offsets = [0, 128], sizes = [128, 128], strides = [1, 1]} : vector<128x256xf32> to vector<128x128xf32>
    %9 = arith.negf %8 : vector<128x128xf32>
    %10 = math.exp %9 : vector<128x128xf32>
    %cst_5 = arith.constant 1.000000e+00 : f32
    %11 = vector.broadcast %cst_5 : f32 to vector<128x128xf32>
    %12 = arith.addf %11, %10 : vector<128x128xf32>
    %13 = arith.divf %11, %12 : vector<128x128xf32>
    %14 = arith.mulf %7, %13 : vector<128x128xf32>
    %c0_6 = arith.constant 0 : index
    %c0_7 = arith.constant 0 : index
    %15 = vector.load %arg5[%c0_6, %c0_7] : memref<1x128xf32, #tpu.memory_space<vmem>>, vector<1x128xf32>
    %16 = vector.broadcast %15 : vector<1x128xf32> to vector<128x128xf32>
    %17 = arith.mulf %14, %16 : vector<128x128xf32>
    %cst_8 = arith.constant dense<0.000000e+00> : vector<128xf32>
    %18 = vector.multi_reduction <add>, %17, %cst_8 [1] : vector<128x128xf32> to vector<128xf32>
    %19 = vector.shape_cast %18 : vector<128xf32> to vector<128x1xf32>
    %c0_9 = arith.constant 0 : index
    %c0_10 = arith.constant 0 : index
    %20 = vector.load %arg6[%c0_9, %c0_10] : memref<1x1xf32, #tpu.memory_space<vmem>>, vector<1x1xf32>
    %21 = vector.broadcast %20 : vector<1x1xf32> to vector<128x1xf32>
    %22 = arith.addf %19, %21 : vector<128x1xf32>
    %c128_i32 = arith.constant 128 : i32
    %23 = arith.muli %arg0, %c128_i32 : i32
    %24 = tpu.assume_multiple %23, 128 : i32
    %25 = arith.index_cast %24 : i32 to index
    %c0_11 = arith.constant 0 : index
    %26 = vector.load %arg7[%25, %c0_11] : memref<384x1xf32, #tpu.memory_space<vmem>>, vector<128x1xf32>
    tpu.vector_store %arg7[%25, %c0_11], %22 {strides = array<i32>} : memref<384x1xf32, #tpu.memory_space<vmem>>, vector<128x1xf32>,
    %c2_i32 = arith.constant 2 : i32
    %27 = arith.cmpi eq, %arg0, %c2_i32 : i32
    %28 = arith.extui %27 : i1 to i32
    %c0_i32 = arith.constant 0 : i32
    %29 = arith.cmpi ne, %28, %c0_i32 : i32
    scf.if %29 {
      %c0_12 = arith.constant 0 : index
      %30 = memref.load %arg1[%c0_12] : memref<1xi32, #tpu.memory_space<smem>>
      %c0_13 = arith.constant 0 : index
      %c0_14 = arith.constant 0 : index
      %31 = vector.load %arg7[%c0_13, %c0_14] : memref<384x1xf32, #tpu.memory_space<vmem>>, vector<384x1xf32>
      %32 = tpu.iota {dimensions = array<i32: 0>} : vector<384x1xi32>
      %33 = vector.broadcast %30 : i32 to vector<384x1xi32>
      %34 = arith.cmpi slt, %32, %33 : vector<384x1xi32>
      %cst_15 = arith.constant 0xFF800000 : f32
      %35 = vector.broadcast %cst_15 : f32 to vector<384x1xf32>
      %36 = arith.select %34, %31, %35 : vector<384x1xi1>, vector<384x1xf32>
      %cst_16 = arith.constant dense<0xFF800000> : vector<1xf32>
      %37 = vector.multi_reduction <maximumf>, %36, %cst_16 [0] : vector<384x1xf32> to vector<1xf32>
      %38 = vector.shape_cast %37 : vector<1xf32> to vector<1x1xf32>
      %39 = vector.broadcast %38 : vector<1x1xf32> to vector<384x1xf32>
      %40 = arith.subf %36, %39 : vector<384x1xf32>
      %41 = math.exp %40 : vector<384x1xf32>
      %cst_17 = arith.constant dense<0.000000e+00> : vector<1xf32>
      %42 = vector.multi_reduction <add>, %41, %cst_17 [0] : vector<384x1xf32> to vector<1xf32>
      %43 = vector.shape_cast %42 : vector<1xf32> to vector<1x1xf32>
      %44 = vector.broadcast %43 : vector<1x1xf32> to vector<384x1xf32>
      %45 = arith.divf %41, %44 : vector<384x1xf32>
      %c0_18 = arith.constant 0 : index
      %c0_19 = arith.constant 0 : index
      %46 = vector.load %arg7[%c0_18, %c0_19] : memref<384x1xf32, #tpu.memory_space<vmem>>, vector<384x1xf32>
      tpu.vector_store %arg7[%c0_18, %c0_19], %45 {strides = array<i32>} : memref<384x1xf32, #tpu.memory_space<vmem>>, vector<384x1xf32>,
    } else {
    }
    return
  }
  func.func @transform_0(%arg0: i32, %arg1: memref<1xi32, #tpu.memory_space<smem>>) -> (i32, i32) {
    %c0_i32 = arith.constant 0 : i32
    %c0_i32_0 = arith.constant 0 : i32
    return %arg0, %c0_i32 : i32, i32
  }
  func.func @transform_1(%arg0: i32, %arg1: memref<1xi32, #tpu.memory_space<smem>>) -> (i32, i32) {
    %c0_i32 = arith.constant 0 : i32
    %c0_i32_0 = arith.constant 0 : i32
    %c0_i32_1 = arith.constant 0 : i32
    return %c0_i32, %c0_i32_0 : i32, i32
  }
  func.func @transform_2(%arg0: i32, %arg1: memref<1xi32, #tpu.memory_space<smem>>) -> (i32, i32) {
    %c0_i32 = arith.constant 0 : i32
    %c0_i32_0 = arith.constant 0 : i32
    %c0_i32_1 = arith.constant 0 : i32
    return %c0_i32, %c0_i32_0 : i32, i32
  }
  func.func @transform_3(%arg0: i32, %arg1: memref<1xi32, #tpu.memory_space<smem>>) -> (i32, i32) {
    %c0_i32 = arith.constant 0 : i32
    %c0_i32_0 = arith.constant 0 : i32
    %c0_i32_1 = arith.constant 0 : i32
    return %c0_i32, %c0_i32_0 : i32, i32
  }
  func.func @transform_4(%arg0: i32, %arg1: memref<1xi32, #tpu.memory_space<smem>>) -> (i32, i32) {
    %c0_i32 = arith.constant 0 : i32
    %c0_i32_0 = arith.constant 0 : i32
    %c0_i32_1 = arith.constant 0 : i32
    return %c0_i32, %c0_i32_0 : i32, i32
  }
  func.func @transform_5(%arg0: i32, %arg1: memref<1xi32, #tpu.memory_space<smem>>) -> (i32, i32) {
    %c0_i32 = arith.constant 0 : i32
    %c0_i32_0 = arith.constant 0 : i32
    %c0_i32_1 = arith.constant 0 : i32
    return %c0_i32, %c0_i32_0 : i32, i32
  }
}

</mosaic_0001>

<bundles_post_ra>
// kernel: gated_attention_forward.1
= control target key start
LH: loop header
LB: loop body
LE: loop exit
PB: predicated region body
PF: predicated region fallthrough
CT: control target
= control target key end

     0   :  { %s2115_s25 = smov 0   ;;  %s4062_s0 = inlined_call_operand.<no memory space> [shape: s32[1], index: 0, kind: input, shape index: {}]   ;;  %s4063_s1 = inlined_call_operand.vmem [shape: f32[384,512], index: 1, kind: input, shape index: {}]   ;;  %s4064_s2 = inlined_call_operand.vmem [shape: f32[512,256], index: 2, kind: input, shape index: {}]   ;;  %s4065_s3 = inlined_call_operand.vmem [shape: f32[1,256], index: 3, kind: input, shape index: {}]   ;;  %s4066_s4 = inlined_call_operand.vmem [shape: f32[1,128], index: 4, kind: input, shape index: {}]   ;;  %s4067_s5 = inlined_call_operand.<no memory space> [shape: f32[1,1], index: 5, kind: input, shape index: {}]   ;;  %s4068_s6 = inlined_call_operand.vmem [shape: f32[384,1], index: 6, kind: output, shape index: {}]  }
   0x1   :  { %11 = sst [smem:[#allocation3]] %s4062_s0  ;;  %v12_v0 = vstv %s4067_s5 }
   0x2   :  { %13 = vst [vmem:[#allocation4] sm:$0x1] %v12_v0 }
   0x3 LB: > { %s2121_s26 = sadd.s32 4294967295, %s2072_s25   ;;  %p1645_p0 = scmp.ge.s32.totalorder %s2072_s25, 1  ;;  %s2072_s25 = sphi %s2115_s25, %s19_s25  }
   0x4   : > { %p188_p1 = scmp.lt.s32.totalorder %s2072_s25, 4 }
   0x6   : > { %p189_p2 = pnand %p1645_p0, %p188_p1 }
   0x7   : > { %v284_v1 = vld [vmem:[%s4064_s2 + $0x8] sm:$0xff] (!%p189_p2)  ;;  %v286_v2 = vld [vmem:[%s4064_s2 + $0x18] sm:$0xff] (!%p189_p2)  ;;  %v283_v3 = vld [vmem:[%s4064_s2] sm:$0xff] (!%p189_p2)  ;;  %s1646_s7 = sshll.u32 (!%p189_p2), %s2121_s26, 4  ;;  %vm4069_vm0 = vcmask (!%p189_p2), 7168   ;;  %p1668_p4 = scmp.ne.s32.totalorder (!%p189_p2), %s2121_s26, 2 }
   0x8   : > { %192 = sbr.rel (%p189_p2) target bundleno = 810 (0x32a), region = 40  ;;  %v1672_v4 = vpack.c.bf16 (!%p189_p2), %v286_v2, %v284_v1  ;;  %v285_v5 = vld [vmem:[%s4064_s2 + $0x10] sm:$0xff] (!%p189_p2)  ;;  %v348_v6 = vld [vmem:[%s4064_s2 + $0x208] sm:$0xff] (!%p189_p2)  ;;  %v350_v7 = vld [vmem:[%s4064_s2 + $0x218] sm:$0xff] (!%p189_p2)  ;;  %p2330_p3 = scmp.lt.s32.totalorder (!%p189_p2), %s1646_s7, 47 }
   0x9   : > { %v1674_v8 = vpack.c.bf16 (!%p189_p2), %v285_v5, %v283_v3  ;;  %v1736_v9 = vpack.c.bf16 (!%p189_p2), %v350_v7, %v348_v6  ;;  %v347_v10 = vld [vmem:[%s4064_s2 + $0x200] sm:$0xff] (!%p189_p2)  ;;  %v349_v11 = vld [vmem:[%s4064_s2 + $0x210] sm:$0xff] (!%p189_p2)  ;;  %v288_v12 = vld [vmem:[%s4064_s2 + $0x28] sm:$0xff] (!%p189_p2) }
   0xa   : > { %1673 = vmatprep.subr.bf16.mxu1 (!%p189_p2), %v1672_v4  ;;  %v1738_v13 = vpack.c.bf16 (!%p189_p2), %v349_v11, %v347_v10  ;;  %v290_v14 = vld [vmem:[%s4064_s2 + $0x38] sm:$0xff] (!%p189_p2)  ;;  %v287_v15 = vld [vmem:[%s4064_s2 + $0x20] sm:$0xff] (!%p189_p2)  ;;  %v289_v16 = vld [vmem:[%s4064_s2 + $0x30] sm:$0xff] (!%p189_p2) }
   0xb   : > { %1675 = vmatpush1.bf16.msra.mxu1 (!%p189_p2), %v1674_v8  ;;  %1737 = vmatprep.subr.bf16.mxu0 (!%p189_p2), %v1736_v9  ;;  %v1676_v17 = vpack.c.bf16 (!%p189_p2), %v290_v14, %v288_v12  ;;  %v1678_v18 = vpack.c.bf16 (!%p189_p2), %v289_v16, %v287_v15  ;;  %v352_v19 = vld [vmem:[%s4064_s2 + $0x228] sm:$0xff] (!%p189_p2)  ;;  %v354_v20 = vld [vmem:[%s4064_s2 + $0x238] sm:$0xff] (!%p189_p2)  ;;  %v351_v21 = vld [vmem:[%s4064_s2 + $0x220] sm:$0xff] (!%p189_p2) }
   0xc   : > { %1739 = vmatpush1.bf16.msra.mxu0 (!%p189_p2), %v1738_v13  ;;  %v1740_v22 = vpack.c.bf16 (!%p189_p2), %v354_v20, %v352_v19  ;;  %v353_v23 = vld [vmem:[%s4064_s2 + $0x230] sm:$0xff] (!%p189_p2)  ;;  %v292_v24 = vld [vmem:[%s4064_s2 + $0x48] sm:$0xff] (!%p189_p2)  ;;  %v294_v25 = vld [vmem:[%s4064_s2 + $0x58] sm:$0xff] (!%p189_p2) }
   0xd   : > { %1677 = vmatprep.subr.bf16.mxu1 (!%p189_p2), %v1676_v17  ;;  %v1742_v26 = vpack.c.bf16 (!%p189_p2), %v353_v23, %v351_v21  ;;  %v1680_v27 = vpack.c.bf16 (!%p189_p2), %v294_v25, %v292_v24  ;;  %v291_v28 = vld [vmem:[%s4064_s2 + $0x40] sm:$0xff] (!%p189_p2)  ;;  %v293_v29 = vld [vmem:[%s4064_s2 + $0x50] sm:$0xff] (!%p189_p2)  ;;  %v356_v30 = vld [vmem:[%s4064_s2 + $0x248] sm:$0xff] (!%p189_p2) }
   0xe   : > { %1741 = vmatprep.subr.bf16.mxu0 (!%p189_p2), %v1740_v22  ;;  %v358_v31 = vld [vmem:[%s4064_s2 + $0x258] sm:$0xff] (!%p189_p2)  ;;  %v355_v32 = vld [vmem:[%s4064_s2 + $0x240] sm:$0xff] (!%p189_p2)  ;;  %v357_v33 = vld [vmem:[%s4064_s2 + $0x250] sm:$0xff] (!%p189_p2)  ;;  %v1682_v34 = vpack.c.bf16 (!%p189_p2), %v293_v29, %v291_v28 }
   0xf   : > { %1679 = vmatpush1.bf16.msra.mxu1 %v1678_v18  ;;  %v1744_v35 = vpack.c.bf16 %v358_v31, %v356_v30  ;;  %v296_v36 = vld [vmem:[%s4064_s2 + $0x68] sm:$0xff]  ;;  %v298_v37 = vld [vmem:[%s4064_s2 + $0x78] sm:$0xff]  ;;  %v295_v38 = vld [vmem:[%s4064_s2 + $0x60] sm:$0xff]  ;;  %v1746_v39 = vpack.c.bf16 %v357_v33, %v355_v32  ;;  %s4310_s7 = smov (!%p2330_p3, %s1646_s7), 47 }
  0x10   : > { %1743 = vmatpush1.bf16.msra.mxu0 %v1742_v26  ;;  %1681 = vmatprep.subr.bf16.mxu1 %v1680_v27  ;;  %v1684_v40 = vpack.c.bf16 %v298_v37, %v296_v36  ;;  %v297_v41 = vld [vmem:[%s4064_s2 + $0x70] sm:$0xff]  ;;  %v360_v42 = vld [vmem:[%s4064_s2 + $0x268] sm:$0xff]  ;;  %v362_v43 = vld [vmem:[%s4064_s2 + $0x278] sm:$0xff]  ;;  %s1671_s28 = sshll.u32 %s4310_s7, 5 }
  0x11   : > { %1745 = vmatprep.subr.bf16.mxu0 %v1744_v35  ;;  %v1748_v44 = vpack.c.bf16 %v362_v43, %v360_v42  ;;  %v359_v45 = vld [vmem:[%s4064_s2 + $0x260] sm:$0xff]  ;;  %v361_v46 = vld [vmem:[%s4064_s2 + $0x270] sm:$0xff]  ;;  %v300_v47 = vld [vmem:[%s4064_s2 + $0x88] sm:$0xff]  ;;  %v1686_v49 = vpack.c.bf16 %v297_v41, %v295_v38  ;;  %s2414_s23 = scalar_lea.vmem %s4063_s1, %s1671_s28  ;;  %s1667_s28 = sshll.u32 %s2121_s26, 7 }
  0x12   : > { %v302_v48 = vld [vmem:[%s4064_s2 + $0x98] sm:$0xff]  ;;  %v364_v50 = vld [vmem:[%s4064_s2 + $0x288] sm:$0xff]  ;;  %v1750_v52 = vpack.c.bf16 %v361_v46, %v359_v45  ;;  %v299_v54 = vld [vmem:[%s4064_s2 + $0x80] sm:$0xff]  ;;  %s2680_s10 = scalar_lea.vmem %s4068_s6, %s1667_s28 }
  0x13   : > { %1683 = vmatpush1.bf16.msra.mxu1 %v1682_v34  ;;  %v366_v51 = vld [vmem:[%s4064_s2 + $0x298] sm:$0xff]  ;;  %v1688_v53 = vpack.c.bf16 %v302_v48, %v300_v47  ;;  %v301_v55 = vld [vmem:[%s4064_s2 + $0x90] sm:$0xff]  ;;  %v363_v56 = vld [vmem:[%s4064_s2 + $0x280] sm:$0xff] }
  0x14   : > { %1747 = vmatpush1.bf16.msra.mxu0 %v1746_v39  ;;  %1685 = vmatprep.subr.bf16.mxu1 %v1684_v40  ;;  %v1752_v57 = vpack.c.bf16 %v366_v51, %v364_v50  ;;  %v365_v58 = vld [vmem:[%s4064_s2 + $0x290] sm:$0xff]  ;;  %v304_v59 = vld [vmem:[%s4064_s2 + $0xa8] sm:$0xff]  ;;  %v306_v60 = vld [vmem:[%s4064_s2 + $0xb8] sm:$0xff]  ;;  %v1690_v63 = vpack.c.bf16 %v301_v55, %v299_v54 }
  0x15   : > { %1749 = vmatprep.subr.bf16.mxu0 %v1748_v44  ;;  %v368_v61 = vld [vmem:[%s4064_s2 + $0x2a8] sm:$0xff]  ;;  %v370_v62 = vld [vmem:[%s4064_s2 + $0x2b8] sm:$0xff]  ;;  %v1754_v0 = vpack.c.bf16 %v365_v58, %v363_v56  ;;  %v1692_v1 = vpack.c.bf16 %v306_v60, %v304_v59  ;;  %v303_v2 = vld [vmem:[%s4064_s2 + $0xa0] sm:$0xff] }
  0x16   : > { %v305_v3 = vld [vmem:[%s4064_s2 + $0xb0] sm:$0xff]  ;;  %v367_v4 = vld [vmem:[%s4064_s2 + $0x2a0] sm:$0xff]  ;;  %v1756_v5 = vpack.c.bf16 %v370_v62, %v368_v61  ;;  %v308_v7 = vld [vmem:[%s4064_s2 + $0xc8] sm:$0xff] }
  0x17   : > { %1687 = vmatpush1.bf16.msra.mxu1 %v1686_v49  ;;  %v369_v6 = vld [vmem:[%s4064_s2 + $0x2b0] sm:$0xff]  ;;  %v310_v8 = vld [vmem:[%s4064_s2 + $0xd8] sm:$0xff]  ;;  %v372_v9 = vld [vmem:[%s4064_s2 + $0x2c8] sm:$0xff]  ;;  %v1694_v11 = vpack.c.bf16 %v305_v3, %v303_v2 }
  0x18   : > { %1751 = vmatpush1.bf16.msra.mxu0 %v1750_v52  ;;  %1689 = vmatprep.subr.bf16.mxu1 %v1688_v53  ;;  %v374_v10 = vld [vmem:[%s4064_s2 + $0x2d8] sm:$0xff]  ;;  %v1758_v12 = vpack.c.bf16 %v369_v6, %v367_v4  ;;  %v1696_v13 = vpack.c.bf16 %v310_v8, %v308_v7  ;;  %v307_v14 = vld [vmem:[%s4064_s2 + $0xc0] sm:$0xff]  ;;  %v309_v15 = vld [vmem:[%s4064_s2 + $0xd0] sm:$0xff] }
  0x19   : > { %1753 = vmatprep.subr.bf16.mxu0 %v1752_v57  ;;  %v371_v16 = vld [vmem:[%s4064_s2 + $0x2c0] sm:$0xff]  ;;  %v1760_v17 = vpack.c.bf16 %v374_v10, %v372_v9  ;;  %v373_v18 = vld [vmem:[%s4064_s2 + $0x2d0] sm:$0xff]  ;;  %v312_v19 = vld [vmem:[%s4064_s2 + $0xe8] sm:$0xff]  ;;  %v1698_v23 = vpack.c.bf16 %v309_v15, %v307_v14 }
  0x1a   : > { %v314_v20 = vld [vmem:[%s4064_s2 + $0xf8] sm:$0xff]  ;;  %v376_v21 = vld [vmem:[%s4064_s2 + $0x2e8] sm:$0xff]  ;;  %v1762_v24 = vpack.c.bf16 %v373_v18, %v371_v16  ;;  %v311_v26 = vld [vmem:[%s4064_s2 + $0xe0] sm:$0xff] }
  0x1b   : > { %1691 = vmatpush1.bf16.msra.mxu1 %v1690_v63  ;;  %v378_v22 = vld [vmem:[%s4064_s2 + $0x2f8] sm:$0xff]  ;;  %v1700_v25 = vpack.c.bf16 %v314_v20, %v312_v19  ;;  %v313_v27 = vld [vmem:[%s4064_s2 + $0xf0] sm:$0xff]  ;;  %v375_v28 = vld [vmem:[%s4064_s2 + $0x2e0] sm:$0xff] }
  0x1c   : > { %1755 = vmatpush1.bf16.msra.mxu0 %v1754_v0  ;;  %1693 = vmatprep.subr.bf16.mxu1 %v1692_v1  ;;  %v1764_v29 = vpack.c.bf16 %v378_v22, %v376_v21  ;;  %v377_v30 = vld [vmem:[%s4064_s2 + $0x2f0] sm:$0xff]  ;;  %v316_v31 = vld [vmem:[%s4064_s2 + $0x108] sm:$0xff]  ;;  %v318_v32 = vld [vmem:[%s4064_s2 + $0x118] sm:$0xff]  ;;  %v1702_v35 = vpack.c.bf16 %v313_v27, %v311_v26 }
  0x1d   : > { %1757 = vmatprep.subr.bf16.mxu0 %v1756_v5  ;;  %v380_v33 = vld [vmem:[%s4064_s2 + $0x308] sm:$0xff]  ;;  %v382_v34 = vld [vmem:[%s4064_s2 + $0x318] sm:$0xff]  ;;  %v1766_v36 = vpack.c.bf16 %v377_v30, %v375_v28  ;;  %v1704_v37 = vpack.c.bf16 %v318_v32, %v316_v31  ;;  %v315_v38 = vld [vmem:[%s4064_s2 + $0x100] sm:$0xff] }
  0x1e   : > { %v317_v39 = vld [vmem:[%s4064_s2 + $0x110] sm:$0xff]  ;;  %v379_v40 = vld [vmem:[%s4064_s2 + $0x300] sm:$0xff]  ;;  %v1768_v41 = vpack.c.bf16 %v382_v34, %v380_v33  ;;  %v320_v43 = vld [vmem:[%s4064_s2 + $0x128] sm:$0xff] }
  0x1f   : > { %1695 = vmatpush1.bf16.msra.mxu1 %v1694_v11  ;;  %v381_v42 = vld [vmem:[%s4064_s2 + $0x310] sm:$0xff]  ;;  %v322_v44 = vld [vmem:[%s4064_s2 + $0x138] sm:$0xff]  ;;  %v384_v45 = vld [vmem:[%s4064_s2 + $0x328] sm:$0xff]  ;;  %v1706_v47 = vpack.c.bf16 %v317_v39, %v315_v38 }
  0x20   : > { %1759 = vmatpush1.bf16.msra.mxu0 %v1758_v12  ;;  %1697 = vmatprep.subr.bf16.mxu1 %v1696_v13  ;;  %v386_v46 = vld [vmem:[%s4064_s2 + $0x338] sm:$0xff]  ;;  %v1770_v48 = vpack.c.bf16 %v381_v42, %v379_v40  ;;  %v1708_v49 = vpack.c.bf16 %v322_v44, %v320_v43  ;;  %v319_v50 = vld [vmem:[%s4064_s2 + $0x120] sm:$0xff]  ;;  %v321_v51 = vld [vmem:[%s4064_s2 + $0x130] sm:$0xff] }
  0x21   : > { %1761 = vmatprep.subr.bf16.mxu0 %v1760_v17  ;;  %v383_v52 = vld [vmem:[%s4064_s2 + $0x320] sm:$0xff]  ;;  %v1772_v53 = vpack.c.bf16 %v386_v46, %v384_v45  ;;  %v385_v54 = vld [vmem:[%s4064_s2 + $0x330] sm:$0xff]  ;;  %v324_v55 = vld [vmem:[%s4064_s2 + $0x148] sm:$0xff]  ;;  %v1710_v59 = vpack.c.bf16 %v321_v51, %v319_v50 }
  0x22   : > { %v326_v56 = vld [vmem:[%s4064_s2 + $0x158] sm:$0xff]  ;;  %v388_v57 = vld [vmem:[%s4064_s2 + $0x348] sm:$0xff]  ;;  %v1774_v60 = vpack.c.bf16 %v385_v54, %v383_v52  ;;  %v323_v62 = vld [vmem:[%s4064_s2 + $0x140] sm:$0xff] }
  0x23   : > { %1699 = vmatpush1.bf16.msra.mxu1 %v1698_v23  ;;  %v390_v58 = vld [vmem:[%s4064_s2 + $0x358] sm:$0xff]  ;;  %v1712_v61 = vpack.c.bf16 %v326_v56, %v324_v55  ;;  %v325_v63 = vld [vmem:[%s4064_s2 + $0x150] sm:$0xff]  ;;  %v387_v0 = vld [vmem:[%s4064_s2 + $0x340] sm:$0xff] }
  0x24   : > { %1763 = vmatpush1.bf16.msra.mxu0 %v1762_v24  ;;  %1701 = vmatprep.subr.bf16.mxu1 %v1700_v25  ;;  %v1776_v1 = vpack.c.bf16 %v390_v58, %v388_v57  ;;  %v389_v2 = vld [vmem:[%s4064_s2 + $0x350] sm:$0xff]  ;;  %v328_v3 = vld [vmem:[%s4064_s2 + $0x168] sm:$0xff]  ;;  %v330_v4 = vld [vmem:[%s4064_s2 + $0x178] sm:$0xff]  ;;  %v1714_v7 = vpack.c.bf16 %v325_v63, %v323_v62 }
  0x25   : > { %1765 = vmatprep.subr.bf16.mxu0 %v1764_v29  ;;  %v392_v5 = vld [vmem:[%s4064_s2 + $0x368] sm:$0xff]  ;;  %v394_v6 = vld [vmem:[%s4064_s2 + $0x378] sm:$0xff]  ;;  %v327_v8 = vld [vmem:[%s4064_s2 + $0x160] sm:$0xff]  ;;  %v1778_v9 = vpack.c.bf16 %v389_v2, %v387_v0  ;;  %v1716_v10 = vpack.c.bf16 %v330_v4, %v328_v3 }
  0x26   : > { %v329_v11 = vld [vmem:[%s4064_s2 + $0x170] sm:$0xff]  ;;  %v391_v12 = vld [vmem:[%s4064_s2 + $0x360] sm:$0xff]  ;;  %v1780_v14 = vpack.c.bf16 %v394_v6, %v392_v5  ;;  %v332_v15 = vld [vmem:[%s4064_s2 + $0x188] sm:$0xff] }
  0x27   : > { %1703 = vmatpush1.bf16.msra.mxu1 %v1702_v35  ;;  %v393_v13 = vld [vmem:[%s4064_s2 + $0x370] sm:$0xff]  ;;  %v334_v16 = vld [vmem:[%s4064_s2 + $0x198] sm:$0xff]  ;;  %v220_v17 = vld [vmem:[%s2414_s23 + $0x8] sm:$0xff]  ;;  %v1718_v21 = vpack.c.bf16 %v329_v11, %v327_v8 }
  0x28   : > { %1767 = vmatpush1.bf16.msra.mxu0 %v1766_v36  ;;  %1705 = vmatprep.subr.bf16.mxu1 %v1704_v37  ;;  %v396_v18 = vld [vmem:[%s4064_s2 + $0x388] sm:$0xff]  ;;  %v398_v19 = vld [vmem:[%s4064_s2 + $0x398] sm:$0xff]  ;;  %v1782_v22 = vpack.c.bf16 %v393_v13, %v391_v12  ;;  %v1720_v23 = vpack.c.bf16 %v334_v16, %v332_v15  ;;  %v331_v24 = vld [vmem:[%s4064_s2 + $0x180] sm:$0xff] }
  0x29   : > { %1769 = vmatprep.subr.bf16.mxu0 %v1768_v41  ;;  %487 = vmatprep.mubr.f32.mxu1 %v220_v17  ;;  %v222_v20 = vld [vmem:[%s2414_s23 + $0x18] sm:$0xff]  ;;  %v333_v25 = vld [vmem:[%s4064_s2 + $0x190] sm:$0xff]  ;;  %v395_v26 = vld [vmem:[%s4064_s2 + $0x380] sm:$0xff]  ;;  %v1784_v27 = vpack.c.bf16 %v398_v19, %v396_v18 }
  0x2a   : > { %648 = vmatprep.mubr.f32.mxu0 %v222_v20  ;;  %v397_v28 = vld [vmem:[%s4064_s2 + $0x390] sm:$0xff]  ;;  %v336_v29 = vld [vmem:[%s4064_s2 + $0x1a8] sm:$0xff]  ;;  %v338_v30 = vld [vmem:[%s4064_s2 + $0x1b8] sm:$0xff]  ;;  %v1722_v33 = vpack.c.bf16 %v333_v25, %v331_v24 }
  0x2b   : > { %1707 = vmatpush1.bf16.msra.mxu1 %v1706_v47  ;;  %v400_v31 = vld [vmem:[%s4064_s2 + $0x3a8] sm:$0xff]  ;;  %v402_v32 = vld [vmem:[%s4064_s2 + $0x3b8] sm:$0xff]  ;;  %v1786_v34 = vpack.c.bf16 %v397_v28, %v395_v26  ;;  %v1724_v35 = vpack.c.bf16 %v338_v30, %v336_v29  ;;  %v335_v36 = vld [vmem:[%s4064_s2 + $0x1a0] sm:$0xff] }
  0x2c   : > { %1771 = vmatpush1.bf16.msra.mxu0 %v1770_v48  ;;  %1709 = vmatprep.subr.bf16.mxu1 %v1708_v49  ;;  %v337_v37 = vld [vmem:[%s4064_s2 + $0x1b0] sm:$0xff]  ;;  %v399_v38 = vld [vmem:[%s4064_s2 + $0x3a0] sm:$0xff]  ;;  %v1788_v39 = vpack.c.bf16 %v402_v32, %v400_v31  ;;  %v340_v41 = vld [vmem:[%s4064_s2 + $0x1c8] sm:$0xff] }
  0x2d   : > { %1773 = vmatprep.subr.bf16.mxu0 %v1772_v53  ;;  %v401_v40 = vld [vmem:[%s4064_s2 + $0x3b0] sm:$0xff]  ;;  %v342_v42 = vld [vmem:[%s4064_s2 + $0x1d8] sm:$0xff]  ;;  %v404_v43 = vld [vmem:[%s4064_s2 + $0x3c8] sm:$0xff]  ;;  %v1726_v45 = vpack.c.bf16 %v337_v37, %v335_v36 }
  0x2e   : > { %v406_v44 = vld [vmem:[%s4064_s2 + $0x3d8] sm:$0xff]  ;;  %v1790_v46 = vpack.c.bf16 %v401_v40, %v399_v38  ;;  %v1728_v47 = vpack.c.bf16 %v342_v42, %v340_v41  ;;  %v339_v48 = vld [vmem:[%s4064_s2 + $0x1c0] sm:$0xff]  ;;  %v341_v49 = vld [vmem:[%s4064_s2 + $0x1d0] sm:$0xff] }
  0x2f   : > { %1711 = vmatpush1.bf16.msra.mxu1 %v1710_v59  ;;  %v403_v50 = vld [vmem:[%s4064_s2 + $0x3c0] sm:$0xff]  ;;  %v1792_v51 = vpack.c.bf16 %v406_v44, %v404_v43  ;;  %v405_v52 = vld [vmem:[%s4064_s2 + $0x3d0] sm:$0xff]  ;;  %v344_v53 = vld [vmem:[%s4064_s2 + $0x1e8] sm:$0xff]  ;;  %v1730_v57 = vpack.c.bf16 %v341_v49, %v339_v48 }
  0x30   : > { %1775 = vmatpush1.bf16.msra.mxu0 %v1774_v60  ;;  %1713 = vmatprep.subr.bf16.mxu1 %v1712_v61  ;;  %v346_v54 = vld [vmem:[%s4064_s2 + $0x1f8] sm:$0xff]  ;;  %v408_v55 = vld [vmem:[%s4064_s2 + $0x3e8] sm:$0xff]  ;;  %v1794_v58 = vpack.c.bf16 %v405_v52, %v403_v50  ;;  %v343_v60 = vld [vmem:[%s4064_s2 + $0x1e0] sm:$0xff] }
  0x31   : > { %1777 = vmatprep.subr.bf16.mxu0 %v1776_v1  ;;  %v410_v56 = vld [vmem:[%s4064_s2 + $0x3f8] sm:$0xff]  ;;  %v1732_v59 = vpack.c.bf16 %v346_v54, %v344_v53  ;;  %v345_v61 = vld [vmem:[%s4064_s2 + $0x1f0] sm:$0xff]  ;;  %v407_v63 = vld [vmem:[%s4064_s2 + $0x3e0] sm:$0xff] }
  0x32   : > { %v1796_v62 = vpack.c.bf16 %v410_v56, %v408_v55  ;;  %v409_v0 = vld [vmem:[%s4064_s2 + $0x3f0] sm:$0xff]  ;;  %v1734_v1 = vpack.c.bf16 %v345_v61, %v343_v60  ;;  %v219_v3 = vld [vmem:[%s2414_s23] sm:$0xff]  ;;  %v224_v5 = vld [vmem:[%s2414_s23 + $0x28] sm:$0xff] }
  0x33   : > { %1715 = vmatpush1.bf16.msra.mxu1 %v1714_v7  ;;  %v1798_v2 = vpack.c.bf16 %v409_v0, %v407_v63  ;;  %v221_v4 = vld [vmem:[%s2414_s23 + $0x10] sm:$0xff]  ;;  %v226_v6 = vld [vmem:[%s2414_s23 + $0x38] sm:$0xff]  ;;  %v223_v7 = vld [vmem:[%s2414_s23 + $0x20] sm:$0xff] }
  0x34   : > { %1779 = vmatpush1.bf16.msra.mxu0 %v1778_v9  ;;  %1717 = vmatprep.subr.bf16.mxu1 %v1716_v10  ;;  %v225_v8 = vld [vmem:[%s2414_s23 + $0x30] sm:$0xff]  ;;  %v228_v9 = vld [vmem:[%s2414_s23 + $0x48] sm:$0xff]  ;;  %v230_v10 = vld [vmem:[%s2414_s23 + $0x58] sm:$0xff] }
  0x35   : > { %1781 = vmatprep.subr.bf16.mxu0 %v1780_v14  ;;  %v227_v11 = vld [vmem:[%s2414_s23 + $0x40] sm:$0xff]  ;;  %v229_v12 = vld [vmem:[%s2414_s23 + $0x50] sm:$0xff]  ;;  %v232_v13 = vld [vmem:[%s2414_s23 + $0x68] sm:$0xff] }
  0x36   : > { %v234_v14 = vld [vmem:[%s2414_s23 + $0x78] sm:$0xff]  ;;  %v231_v15 = vld [vmem:[%s2414_s23 + $0x60] sm:$0xff]  ;;  %v233_v16 = vld [vmem:[%s2414_s23 + $0x70] sm:$0xff] }
  0x37   : > { %1719 = vmatpush1.bf16.msra.mxu1 %v1718_v21  ;;  %v236_v17 = vld [vmem:[%s2414_s23 + $0x88] sm:$0xff]  ;;  %v238_v18 = vld [vmem:[%s2414_s23 + $0x98] sm:$0xff]  ;;  %v235_v19 = vld [vmem:[%s2414_s23 + $0x80] sm:$0xff] }
  0x38   : > { %1783 = vmatpush1.bf16.msra.mxu0 %v1782_v22  ;;  %1721 = vmatprep.subr.bf16.mxu1 %v1720_v23  ;;  %v237_v20 = vld [vmem:[%s2414_s23 + $0x90] sm:$0xff]  ;;  %v240_v21 = vld [vmem:[%s2414_s23 + $0xa8] sm:$0xff]  ;;  %v242_v22 = vld [vmem:[%s2414_s23 + $0xb8] sm:$0xff] }
  0x39   : > { %1785 = vmatprep.subr.bf16.mxu0 %v1784_v27  ;;  %v239_v23 = vld [vmem:[%s2414_s23 + $0xa0] sm:$0xff]  ;;  %v241_v24 = vld [vmem:[%s2414_s23 + $0xb0] sm:$0xff]  ;;  %v244_v25 = vld [vmem:[%s2414_s23 + $0xc8] sm:$0xff] }
  0x3a   : > { %v246_v26 = vld [vmem:[%s2414_s23 + $0xd8] sm:$0xff]  ;;  %v243_v27 = vld [vmem:[%s2414_s23 + $0xc0] sm:$0xff]  ;;  %v245_v28 = vld [vmem:[%s2414_s23 + $0xd0] sm:$0xff] }
  0x3b   : > { %1723 = vmatpush1.bf16.msra.mxu1 %v1722_v33  ;;  %v248_v29 = vld [vmem:[%s2414_s23 + $0xe8] sm:$0xff]  ;;  %v250_v30 = vld [vmem:[%s2414_s23 + $0xf8] sm:$0xff]  ;;  %v247_v31 = vld [vmem:[%s2414_s23 + $0xe0] sm:$0xff] }
  0x3c   : > { %1787 = vmatpush1.bf16.msra.mxu0 %v1786_v34  ;;  %1725 = vmatprep.subr.bf16.mxu1 %v1724_v35  ;;  %v249_v32 = vld [vmem:[%s2414_s23 + $0xf0] sm:$0xff]  ;;  %v252_v33 = vld [vmem:[%s2414_s23 + $0x108] sm:$0xff]  ;;  %v254_v34 = vld [vmem:[%s2414_s23 + $0x118] sm:$0xff] }
  0x3d   : > { %1789 = vmatprep.subr.bf16.mxu0 %v1788_v39  ;;  %v251_v35 = vld [vmem:[%s2414_s23 + $0x100] sm:$0xff]  ;;  %v253_v36 = vld [vmem:[%s2414_s23 + $0x110] sm:$0xff]  ;;  %v256_v37 = vld [vmem:[%s2414_s23 + $0x128] sm:$0xff] }
  0x3e   : > { %v258_v38 = vld [vmem:[%s2414_s23 + $0x138] sm:$0xff]  ;;  %v255_v39 = vld [vmem:[%s2414_s23 + $0x120] sm:$0xff]  ;;  %v257_v40 = vld [vmem:[%s2414_s23 + $0x130] sm:$0xff] }
  0x3f   : > { %1727 = vmatpush1.bf16.msra.mxu1 %v1726_v45  ;;  %v260_v41 = vld [vmem:[%s2414_s23 + $0x148] sm:$0xff]  ;;  %v262_v42 = vld [vmem:[%s2414_s23 + $0x158] sm:$0xff]  ;;  %v259_v43 = vld [vmem:[%s2414_s23 + $0x140] sm:$0xff] }
  0x40   : > { %1791 = vmatpush1.bf16.msra.mxu0 %v1790_v46  ;;  %1729 = vmatprep.subr.bf16.mxu1 %v1728_v47  ;;  %v261_v44 = vld [vmem:[%s2414_s23 + $0x150] sm:$0xff]  ;;  %v264_v45 = vld [vmem:[%s2414_s23 + $0x168] sm:$0xff]  ;;  %v266_v46 = vld [vmem:[%s2414_s23 + $0x178] sm:$0xff] }
  0x41   : > { %1793 = vmatprep.subr.bf16.mxu0 %v1792_v51  ;;  %v263_v47 = vld [vmem:[%s2414_s23 + $0x160] sm:$0xff]  ;;  %v265_v48 = vld [vmem:[%s2414_s23 + $0x170] sm:$0xff]  ;;  %v268_v49 = vld [vmem:[%s2414_s23 + $0x188] sm:$0xff] }
  0x42   : > { %v270_v50 = vld [vmem:[%s2414_s23 + $0x198] sm:$0xff]  ;;  %v267_v51 = vld [vmem:[%s2414_s23 + $0x180] sm:$0xff]  ;;  %v269_v52 = vld [vmem:[%s2414_s23 + $0x190] sm:$0xff] }
  0x43   : > { %1731 = vmatpush1.bf16.msra.mxu1 %v1730_v57  ;;  %v272_v53 = vld [vmem:[%s2414_s23 + $0x1a8] sm:$0xff]  ;;  %v274_v54 = vld [vmem:[%s2414_s23 + $0x1b8] sm:$0xff]  ;;  %v271_v55 = vld [vmem:[%s2414_s23 + $0x1a0] sm:$0xff] }
  0x44   : > { %1795 = vmatpush1.bf16.msra.mxu0 %v1794_v58  ;;  %1733 = vmatprep.subr.bf16.mxu1 %v1732_v59  ;;  %v273_v56 = vld [vmem:[%s2414_s23 + $0x1b0] sm:$0xff]  ;;  %v276_v57 = vld [vmem:[%s2414_s23 + $0x1c8] sm:$0xff]  ;;  %v278_v58 = vld [vmem:[%s2414_s23 + $0x1d8] sm:$0xff] }
  0x45   : > { %1797 = vmatprep.subr.bf16.mxu0 %v1796_v62  ;;  %v275_v59 = vld [vmem:[%s2414_s23 + $0x1c0] sm:$0xff]  ;;  %v277_v60 = vld [vmem:[%s2414_s23 + $0x1d0] sm:$0xff]  ;;  %v280_v61 = vld [vmem:[%s2414_s23 + $0x1e8] sm:$0xff] }
  0x46   : > { %v282_v62 = vld [vmem:[%s2414_s23 + $0x1f8] sm:$0xff]  ;;  %v279_v63 = vld [vmem:[%s2414_s23 + $0x1e0] sm:$0xff]  ;;  %v281_v0 = vld [vmem:[%s2414_s23 + $0x1f0] sm:$0xff] }
  0x47   : > { %1735 = vmatpush1.bf16.msra.mxu1 %v1734_v1  ;;  %v413_v1 = vlaneseq }
  0x48   : > { %1799 = vmatpush1.bf16.msra.mxu0 %v1798_v2 }
  0x49   : > { %v2588_v2 = vshrl.u32 %v413_v1, 7 }
  0x4a   : > { %488 = vmatmul.mubr.f32.vlgmr.msra.gmra.mrb[0].mxu1 %v219_v3 }
  0x4b   : > { %649 = vmatmul.mubr.f32.vlgmr.msra.gmra.mrb[0].mxu0 %v221_v4  ;;  %493 = vmatprep.mubr.f32.mxu1 %v224_v5  ;;  %v415_v3 = vsub.s32 0, %v2588_v2  ;;  %v411_v4 = vld [vmem:[%s4065_s3] sm:$0x3]  ;;  %v419_v5 = vsub.s32 1, %v2588_v2 }
  0x4c   : > { %654 = vmatprep.mubr.f32.mxu0 %v226_v6 }
  0x4d   : > { %v2595_v6 = vrot.slane %v411_v4, %v415_v3 }
  0x4e   : > { %494 = vmatmul.mubr.f32.gmra.mrb[2].mxu1 %v223_v7  ;;  %v2597_v7 = vrot.slane %v411_v4, %v419_v5 }
  0x4f   : > { %655 = vmatmul.mubr.f32.gmra.mrb[2].mxu0 %v225_v8  ;;  %499 = vmatprep.mubr.f32.mxu1 %v228_v9 }
  0x50   : > { %660 = vmatprep.mubr.f32.mxu0 %v230_v10 }
  0x52   : > { %500 = vmatmul.mubr.f32.gmra.mrb[4].mxu1 %v227_v11 }
  0x53   : > { %661 = vmatmul.mubr.f32.gmra.mrb[4].mxu0 %v229_v12  ;;  %505 = vmatprep.mubr.f32.mxu1 %v232_v13 }
  0x54   : > { %666 = vmatprep.mubr.f32.mxu0 %v234_v14 }
  0x56   : > { %506 = vmatmul.mubr.f32.gmra.mrb[6].mxu1 %v231_v15 }
  0x57   : > { %667 = vmatmul.mubr.f32.gmra.mrb[6].mxu0 %v233_v16  ;;  %511 = vmatprep.mubr.f32.mxu1 %v236_v17 }
  0x58   : > { %672 = vmatprep.mubr.f32.mxu0 %v238_v18 }
  0x5a   : > { %512 = vmatmul.mubr.f32.gmra.mrb[8].mxu1 %v235_v19 }
  0x5b   : > { %673 = vmatmul.mubr.f32.gmra.mrb[8].mxu0 %v237_v20  ;;  %517 = vmatprep.mubr.f32.mxu1 %v240_v21 }
  0x5c   : > { %678 = vmatprep.mubr.f32.mxu0 %v242_v22 }
  0x5e   : > { %518 = vmatmul.mubr.f32.gmra.mrb[10].mxu1 %v239_v23 }
  0x5f   : > { %679 = vmatmul.mubr.f32.gmra.mrb[10].mxu0 %v241_v24  ;;  %523 = vmatprep.mubr.f32.mxu1 %v244_v25 }
  0x60   : > { %684 = vmatprep.mubr.f32.mxu0 %v246_v26 }
  0x62   : > { %524 = vmatmul.mubr.f32.gmra.mrb[12].mxu1 %v243_v27 }
  0x63   : > { %685 = vmatmul.mubr.f32.gmra.mrb[12].mxu0 %v245_v28  ;;  %529 = vmatprep.mubr.f32.mxu1 %v248_v29 }
  0x64   : > { %690 = vmatprep.mubr.f32.mxu0 %v250_v30 }
  0x66   : > { %530 = vmatmul.mubr.f32.gmra.mrb[14].mxu1 %v247_v31 }
  0x67   : > { %691 = vmatmul.mubr.f32.gmra.mrb[14].mxu0 %v249_v32  ;;  %535 = vmatprep.mubr.f32.mxu1 %v252_v33 }
  0x68   : > { %696 = vmatprep.mubr.f32.mxu0 %v254_v34 }
  0x6a   : > { %536 = vmatmul.mubr.f32.gmra.mrb[16].mxu1 %v251_v35 }
  0x6b   : > { %697 = vmatmul.mubr.f32.gmra.mrb[16].mxu0 %v253_v36  ;;  %541 = vmatprep.mubr.f32.mxu1 %v256_v37 }
  0x6c   : > { %702 = vmatprep.mubr.f32.mxu0 %v258_v38 }
  0x6e   : > { %542 = vmatmul.mubr.f32.gmra.mrb[18].mxu1 %v255_v39 }
  0x6f   : > { %703 = vmatmul.mubr.f32.gmra.mrb[18].mxu0 %v257_v40  ;;  %547 = vmatprep.mubr.f32.mxu1 %v260_v41 }
  0x70   : > { %708 = vmatprep.mubr.f32.mxu0 %v262_v42 }
  0x72   : > { %548 = vmatmul.mubr.f32.gmra.mrb[20].mxu1 %v259_v43 }
  0x73   : > { %709 = vmatmul.mubr.f32.gmra.mrb[20].mxu0 %v261_v44  ;;  %553 = vmatprep.mubr.f32.mxu1 %v264_v45 }
  0x74   : > { %714 = vmatprep.mubr.f32.mxu0 %v266_v46 }
  0x76   : > { %554 = vmatmul.mubr.f32.gmra.mrb[22].mxu1 %v263_v47 }
  0x77   : > { %715 = vmatmul.mubr.f32.gmra.mrb[22].mxu0 %v265_v48  ;;  %559 = vmatprep.mubr.f32.mxu1 %v268_v49 }
  0x78   : > { %720 = vmatprep.mubr.f32.mxu0 %v270_v50 }
  0x7a   : > { %560 = vmatmul.mubr.f32.gmra.mrb[24].mxu1 %v267_v51 }
  0x7b   : > { %721 = vmatmul.mubr.f32.gmra.mrb[24].mxu0 %v269_v52  ;;  %565 = vmatprep.mubr.f32.mxu1 %v272_v53 }
  0x7c   : > { %726 = vmatprep.mubr.f32.mxu0 %v274_v54 }
  0x7e   : > { %566 = vmatmul.mubr.f32.gmra.mrb[26].mxu1 %v271_v55 }
  0x7f   : > { %727 = vmatmul.mubr.f32.gmra.mrb[26].mxu0 %v273_v56  ;;  %571 = vmatprep.mubr.f32.mxu1 %v276_v57 }
  0x80   : > { %732 = vmatprep.mubr.f32.mxu0 %v278_v58 }
  0x82   : > { %572 = vmatmul.mubr.f32.gmra.mrb[28].mxu1 %v275_v59 }
  0x83   : > { %733 = vmatmul.mubr.f32.gmra.mrb[28].mxu0 %v277_v60  ;;  %577 = vmatprep.mubr.f32.mxu1 %v280_v61 }
  0x84   : > { %738 = vmatprep.mubr.f32.mxu0 %v282_v62 }
  0x86   : > { %578 = vmatmul.mubr.f32.gmra.mrb[30].mxu1 %v279_v63 }
  0x87   : > { %739 = vmatmul.mubr.f32.gmra.mrb[30].mxu0 %v281_v0 }
 0x11d   : > { %v489_v8 = vpop.f32.mrb[0].mxu1 }
 0x11e   : > { %v490_v9 = vadd.f32 %v489_v8, %v2595_v6  ;;  %v491_v10 = vpop.f32.mrb[1].mxu1  ;;  %v650_v11 = vpop.f32.mrb[0].mxu0 }
 0x11f   : > { %v492_v12 = vadd.f32 %v491_v10, %v2597_v7  ;;  %v652_v13 = vpop.f32.mrb[1].mxu0 }
 0x120   : > { %v651_v14 = vadd.f32 %v650_v11, %v490_v9 }
 0x121   : > { %v653_v15 = vadd.f32 %v652_v13, %v492_v12  ;;  %v495_v16 = vpop.f32.mrb[2].mxu1 }
 0x122   : > { %v496_v17 = vadd.f32 %v495_v16, %v2595_v6  ;;  %v497_v18 = vpop.f32.mrb[3].mxu1  ;;  %v656_v19 = vpop.f32.mrb[2].mxu0 }
 0x123   : > { %v1649_v20 = vmul.f32 -1.442695, %v653_v15  ;;  %v498_v21 = vadd.f32 %v497_v18, %v2597_v7  ;;  %v658_v22 = vpop.f32.mrb[3].mxu0 }
 0x124   : > { %v657_v23 = vadd.f32 %v656_v19, %v496_v17 }
 0x125   : > { %1872 = vpow2.f32 %v1649_v20  ;;  %v659_v24 = vadd.f32 %v658_v22, %v498_v21  ;;  %v501_v25 = vpop.f32.mrb[4].mxu1 }
 0x126   : > { %v502_v26 = vadd.f32 %v501_v25, %v2595_v6  ;;  %v503_v27 = vpop.f32.mrb[5].mxu1  ;;  %v662_v28 = vpop.f32.mrb[4].mxu0 }
 0x127   : > { %v1650_v29 = vmul.f32 -1.442695, %v659_v24  ;;  %v504_v30 = vadd.f32 %v503_v27, %v2597_v7  ;;  %v664_v31 = vpop.f32.mrb[5].mxu0  ;;  %v2624_v27 = vld [vmem:[%s4066_s4] ss:$0 sm:$0xff] }
 0x128   : > { %v663_v32 = vadd.f32 %v662_v28, %v502_v26 }
 0x129   : > { %1874 = vpow2.f32 %v1650_v29  ;;  %v665_v33 = vadd.f32 %v664_v31, %v504_v30  ;;  %v507_v34 = vpop.f32.mrb[6].mxu1 }
 0x12a   : > { %v508_v35 = vadd.f32 %v507_v34, %v2595_v6  ;;  %v509_v36 = vpop.f32.mrb[7].mxu1  ;;  %v668_v37 = vpop.f32.mrb[6].mxu0 }
 0x12b   : > { %v1651_v38 = vmul.f32 -1.442695, %v665_v33  ;;  %v510_v39 = vadd.f32 %v509_v36, %v2597_v7  ;;  %v670_v40 = vpop.f32.mrb[7].mxu0 }
 0x12c   : > { %v669_v41 = vadd.f32 %v668_v37, %v508_v35 }
 0x12d   : > { %1876 = vpow2.f32 %v1651_v38  ;;  %v671_v42 = vadd.f32 %v670_v40, %v510_v39  ;;  %v513_v43 = vpop.f32.mrb[8].mxu1 }
 0x12e   : > { %v514_v44 = vadd.f32 %v513_v43, %v2595_v6  ;;  %v515_v45 = vpop.f32.mrb[9].mxu1  ;;  %v674_v46 = vpop.f32.mrb[8].mxu0  ;;  %1878 = vtanh.f32 %v651_v14 }
 0x12f   : > { %v1873_v47 = vpop.eup %1872  ;;  %v1652_v48 = vmul.f32 -1.442695, %v671_v42  ;;  %v516_v49 = vadd.f32 %v515_v45, %v2597_v7  ;;  %v676_v50 = vpop.f32.mrb[9].mxu0 }
 0x130   : > { %v809_v51 = vadd.f32 1.0, %v1873_v47  ;;  %v675_v52 = vadd.f32 %v674_v46, %v514_v44 }
 0x131   : > { %1880 = vpow2.f32 %v1652_v48  ;;  %v677_v53 = vadd.f32 %v676_v50, %v516_v49  ;;  %v519_v54 = vpop.f32.mrb[10].mxu1 }
 0x132   : > { %1882 = vrcp.f32 %v809_v51  ;;  %v520_v55 = vadd.f32 %v519_v54, %v2595_v6  ;;  %v521_v56 = vpop.f32.mrb[11].mxu1  ;;  %v680_v57 = vpop.f32.mrb[10].mxu0 }
 0x133   : > { %v1875_v58 = vpop.eup %1874  ;;  %v1653_v59 = vmul.f32 -1.442695, %v677_v53  ;;  %v522_v60 = vadd.f32 %v521_v56, %v2597_v7  ;;  %v682_v61 = vpop.f32.mrb[11].mxu0  ;;  %1884 = vtanh.f32 %v657_v23 }
 0x134   : > { %v810_v62 = vadd.f32 1.0, %v1875_v58  ;;  %v2611_v63 = vadd.f32 %v680_v57, %v520_v55 }
 0x135   : > { %1886 = vpow2.f32 %v1653_v59  ;;  %v683_v0 = vadd.f32 %v682_v61, %v522_v60  ;;  %v525_v1 = vpop.f32.mrb[12].mxu1 }
 0x136   : > { %1888 = vrcp.f32 %v810_v62  ;;  %v526_v3 = vadd.f32 %v525_v1, %v2595_v6  ;;  %v527_v4 = vpop.f32.mrb[13].mxu1  ;;  %v686_v5 = vpop.f32.mrb[12].mxu0 }
 0x137   : > { %v1877_v8 = vpop.eup %1876  ;;  %v1654_v9 = vmul.f32 -1.442695, %v683_v0  ;;  %v528_v10 = vadd.f32 %v527_v4, %v2597_v7  ;;  %v688_v11 = vpop.f32.mrb[13].mxu0  ;;  %1890 = vtanh.f32 %v663_v32 }
 0x138   : > { %v811_v12 = vadd.f32 1.0, %v1877_v8  ;;  %v2615_v13 = vadd.f32 %v686_v5, %v526_v3  ;;  %v1879_v16 = vpop.eup %1878 }
 0x139   : > { %1892 = vpow2.f32 %v1654_v9  ;;  %v689_v14 = vadd.f32 %v688_v11, %v528_v10  ;;  %v531_v15 = vpop.f32.mrb[14].mxu1 }
 0x13a   : > { %1894 = vrcp.f32 %v811_v12  ;;  %v532_v17 = vadd.f32 %v531_v15, %v2595_v6  ;;  %v533_v18 = vpop.f32.mrb[15].mxu1  ;;  %v692_v19 = vpop.f32.mrb[14].mxu0 }
 0x13b   : > { %v1881_v20 = vpop.eup %1880  ;;  %v1655_v21 = vmul.f32 -1.442695, %v689_v14  ;;  %v534_v22 = vadd.f32 %v533_v18, %v2597_v7  ;;  %v694_v23 = vpop.f32.mrb[15].mxu0  ;;  %1896 = vtanh.f32 %v669_v41 }
 0x13c   : > { %v1883_v24 = vpop.eup %1882  ;;  %v812_v25 = vadd.f32 1.0, %v1881_v20  ;;  %v2619_v26 = vadd.f32 %v692_v19, %v532_v17 }
 0x13d   : > { %1898 = vpow2.f32 %v1655_v21  ;;  %v695_v28 = vadd.f32 %v694_v23, %v534_v22  ;;  %v537_v29 = vpop.f32.mrb[16].mxu1  ;;  %v857_v30 = vmul.f32 %v1883_v24, %v1879_v16  ;;  %v1885_v31 = vpop.eup %1884 }
 0x13e   : > { %1900 = vrcp.f32 %v812_v25  ;;  %v538_v32 = vadd.f32 %v537_v29, %v2595_v6  ;;  %v539_v33 = vpop.f32.mrb[17].mxu1  ;;  %v698_v34 = vpop.f32.mrb[16].mxu0 }
 0x13f   : > { %v1887_v35 = vpop.eup %1886  ;;  %v1656_v36 = vmul.f32 -1.442695, %v695_v28  ;;  %v540_v37 = vadd.f32 %v539_v33, %v2597_v7  ;;  %v700_v38 = vpop.f32.mrb[17].mxu0  ;;  %v880_v39 = vmul.f32 %v2624_v27, %v857_v30  ;;  %1902 = vtanh.f32 %v675_v52 }
 0x140   : > { %v1889_v40 = vpop.eup %1888  ;;  %v813_v41 = vadd.f32 1.0, %v1887_v35  ;;  %v2629_v42 = vadd.f32 %v698_v34, %v538_v32 }
 0x141   : > { %1904 = vpow2.f32 %v1656_v36  ;;  %v701_v43 = vadd.f32 %v700_v38, %v540_v37  ;;  %v543_v44 = vpop.f32.mrb[18].mxu1  ;;  %896 = vadd.xlane.f32.xlu0 %v880_v39  ;;  %v858_v45 = vmul.f32 %v1889_v40, %v1885_v31  ;;  %v1891_v46 = vpop.eup %1890 }
 0x142   : > { %1906 = vrcp.f32 %v813_v41  ;;  %v544_v47 = vadd.f32 %v543_v44, %v2595_v6  ;;  %v545_v48 = vpop.f32.mrb[19].mxu1  ;;  %v704_v49 = vpop.f32.mrb[18].mxu0 }
 0x143   : > { %v1893_v50 = vpop.eup %1892  ;;  %v1657_v51 = vmul.f32 -1.442695, %v701_v43  ;;  %v546_v53 = vadd.f32 %v545_v48, %v2597_v7  ;;  %v706_v54 = vpop.f32.mrb[19].mxu0  ;;  %v881_v52 = vmul.f32 %v2624_v27, %v858_v45  ;;  %1908 = vtanh.f32 %v2611_v63 }
 0x144   : > { %v1895_v55 = vpop.eup %1894  ;;  %v814_v56 = vadd.f32 1.0, %v1893_v50  ;;  %v2635_v57 = vadd.f32 %v704_v49, %v544_v47 }
 0x145   : > { %1910 = vpow2.f32 %v1657_v51  ;;  %v707_v58 = vadd.f32 %v706_v54, %v546_v53  ;;  %v549_v59 = vpop.f32.mrb[20].mxu1  ;;  %898 = vadd.xlane.f32.xlu0 %v881_v52  ;;  %v859_v60 = vmul.f32 %v1895_v55, %v1891_v46  ;;  %v1897_v61 = vpop.eup %1896 }
 0x146   : > { %1912 = vrcp.f32 %v814_v56  ;;  %v550_v62 = vadd.f32 %v549_v59, %v2595_v6  ;;  %v551_v0 = vpop.f32.mrb[21].mxu1  ;;  %v710_v1 = vpop.f32.mrb[20].mxu0 }
 0x147   : > { %v1899_v3 = vpop.eup %1898  ;;  %v1658_v4 = vmul.f32 -1.442695, %v707_v58  ;;  %v552_v5 = vadd.f32 %v551_v0, %v2597_v7  ;;  %v712_v8 = vpop.f32.mrb[21].mxu0  ;;  %v882_v63 = vmul.f32 %v2624_v27, %v859_v60  ;;  %1914 = vtanh.f32 %v2615_v13 }
 0x148   : > { %v1901_v9 = vpop.eup %1900  ;;  %v815_v10 = vadd.f32 1.0, %v1899_v3  ;;  %v2641_v11 = vadd.f32 %v710_v1, %v550_v62 }
 0x149   : > { %1916 = vpow2.f32 %v1658_v4  ;;  %v713_v12 = vadd.f32 %v712_v8, %v552_v5  ;;  %v555_v14 = vpop.f32.mrb[22].mxu1  ;;  %900 = vadd.xlane.f32.xlu1 %v882_v63  ;;  %v860_v15 = vmul.f32 %v1901_v9, %v1897_v61  ;;  %v1903_v16 = vpop.eup %1902 }
 0x14a   : > { %1918 = vrcp.f32 %v815_v10  ;;  %v556_v17 = vadd.f32 %v555_v14, %v2595_v6  ;;  %v557_v18 = vpop.f32.mrb[23].mxu1  ;;  %v716_v19 = vpop.f32.mrb[22].mxu0 }
 0x14b   : > { %v1905_v20 = vpop.eup %1904  ;;  %v1659_v21 = vmul.f32 -1.442695, %v713_v12  ;;  %v558_v22 = vadd.f32 %v557_v18, %v2597_v7  ;;  %v718_v23 = vpop.f32.mrb[23].mxu0  ;;  %v883_v13 = vmul.f32 %v2624_v27, %v860_v15  ;;  %1920 = vtanh.f32 %v2619_v26 }
 0x14c   : > { %v1907_v24 = vpop.eup %1906  ;;  %v816_v25 = vadd.f32 1.0, %v1905_v20  ;;  %v2647_v28 = vadd.f32 %v716_v19, %v556_v17 }
 0x14d   : > { %1922 = vpow2.f32 %v1659_v21  ;;  %v719_v29 = vadd.f32 %v718_v23, %v558_v22  ;;  %v561_v30 = vpop.f32.mrb[24].mxu1  ;;  %902 = vadd.xlane.f32.xlu1 %v883_v13  ;;  %v861_v31 = vmul.f32 %v1907_v24, %v1903_v16  ;;  %v1909_v32 = vpop.eup %1908 }
 0x14e   : > { %1924 = vrcp.f32 %v816_v25  ;;  %v562_v33 = vadd.f32 %v561_v30, %v2595_v6  ;;  %v563_v34 = vpop.f32.mrb[25].mxu1  ;;  %v722_v35 = vpop.f32.mrb[24].mxu0 }
 0x14f   : > { %v1911_v36 = vpop.eup %1910  ;;  %v1660_v37 = vmul.f32 -1.442695, %v719_v29  ;;  %v564_v38 = vadd.f32 %v563_v34, %v2597_v7  ;;  %v724_v39 = vpop.f32.mrb[25].mxu0  ;;  %v884_v26 = vmul.f32 %v2624_v27, %v861_v31  ;;  %1926 = vtanh.f32 %v2629_v42 }
 0x150   : > { %v1913_v40 = vpop.eup %1912  ;;  %v817_v41 = vadd.f32 1.0, %v1911_v36  ;;  %v2653_v43 = vadd.f32 %v722_v35, %v562_v33 }
 0x151   : > { %1928 = vpow2.f32 %v1660_v37  ;;  %v725_v44 = vadd.f32 %v724_v39, %v564_v38  ;;  %v567_v45 = vpop.f32.mrb[26].mxu1  ;;  %904 = vadd.xlane.f32.xlu0 %v884_v26  ;;  %v862_v46 = vmul.f32 %v1913_v40, %v1909_v32  ;;  %v1915_v47 = vpop.eup %1914 }
 0x152   : > { %1930 = vrcp.f32 %v817_v41  ;;  %v568_v48 = vadd.f32 %v567_v45, %v2595_v6  ;;  %v569_v49 = vpop.f32.mrb[27].mxu1  ;;  %v728_v50 = vpop.f32.mrb[26].mxu0 }
 0x153   : > { %v1917_v51 = vpop.eup %1916  ;;  %v1661_v53 = vmul.f32 -1.442695, %v725_v44  ;;  %v570_v54 = vadd.f32 %v569_v49, %v2597_v7  ;;  %v730_v52 = vpop.f32.mrb[27].mxu0  ;;  %v885_v42 = vmul.f32 %v2624_v27, %v862_v46  ;;  %1932 = vtanh.f32 %v2635_v57 }
 0x154   : > { %v1919_v55 = vpop.eup %1918  ;;  %v818_v56 = vadd.f32 1.0, %v1917_v51  ;;  %v729_v58 = vadd.f32 %v728_v50, %v568_v48 }
 0x155   : > { %1934 = vpow2.f32 %v1661_v53  ;;  %v731_v59 = vadd.f32 %v730_v52, %v570_v54  ;;  %v573_v60 = vpop.f32.mrb[28].mxu1  ;;  %906 = vadd.xlane.f32.xlu1 %v885_v42  ;;  %v863_v61 = vmul.f32 %v1919_v55, %v1915_v47  ;;  %v1921_v62 = vpop.eup %1920 }
 0x156   : > { %1936 = vrcp.f32 %v818_v56  ;;  %v574_v0 = vadd.f32 %v573_v60, %v2595_v6  ;;  %v575_v1 = vpop.f32.mrb[29].mxu1  ;;  %v734_v3 = vpop.f32.mrb[28].mxu0 }
 0x157   : > { %v1923_v4 = vpop.eup %1922  ;;  %v1662_v5 = vmul.f32 -1.442695, %v731_v59  ;;  %v576_v8 = vadd.f32 %v575_v1, %v2597_v7  ;;  %v736_v63 = vpop.f32.mrb[29].mxu0  ;;  %v886_v57 = vmul.f32 %v2624_v27, %v863_v61  ;;  %1938 = vtanh.f32 %v2641_v11 }
 0x158   : > { %v1925_v9 = vpop.eup %1924  ;;  %v819_v10 = vadd.f32 1.0, %v1923_v4  ;;  %v735_v12 = vadd.f32 %v734_v3, %v574_v0 }
 0x159   : > { %1940 = vpow2.f32 %v1662_v5  ;;  %v737_v14 = vadd.f32 %v736_v63, %v576_v8  ;;  %v579_v15 = vpop.f32.mrb[30].mxu1  ;;  %908 = vadd.xlane.f32.xlu0 %v886_v57  ;;  %v864_v16 = vmul.f32 %v1925_v9, %v1921_v62  ;;  %v1927_v17 = vpop.eup %1926  ;;  %v1666_v5 = vld [vmem:[#allocation4] ss:$0 sm:$0xff] }
 0x15a   : > { %1942 = vrcp.f32 %v819_v10  ;;  %v580_v18 = vadd.f32 %v579_v15, %v2595_v6  ;;  %v581_v19 = vpop.f32.mrb[31].mxu1  ;;  %v740_v20 = vpop.f32.mrb[30].mxu0 }
 0x15b   : > { %v1929_v21 = vpop.eup %1928  ;;  %v1663_v22 = vmul.f32 -1.442695, %v737_v14  ;;  %v582_v23 = vadd.f32 %v581_v19, %v2597_v7  ;;  %v742_v13 = vpop.f32.mrb[31].mxu0  ;;  %v887_v11 = vmul.f32 %v2624_v27, %v864_v16  ;;  %1944 = vtanh.f32 %v2647_v28 }
 0x15c   : > { %v1931_v24 = vpop.eup %1930  ;;  %v820_v25 = vadd.f32 1.0, %v1929_v21  ;;  %v741_v29 = vadd.f32 %v740_v20, %v580_v18 }
 0x15d   : > { %1946 = vpow2.f32 %v1663_v22  ;;  %v743_v30 = vadd.f32 %v742_v13, %v582_v23  ;;  %910 = vadd.xlane.f32.xlu1 %v887_v11  ;;  %v865_v31 = vmul.f32 %v1931_v24, %v1927_v17  ;;  %v1933_v32 = vpop.eup %1932 }
 0x15e   : > { %1948 = vrcp.f32 %v820_v25 }
 0x15f   : > { %v1935_v6 = vpop.eup %1934  ;;  %v1664_v33 = vmul.f32 -1.442695, %v743_v30  ;;  %v888_v34 = vmul.f32 %v2624_v27, %v865_v31  ;;  %1950 = vtanh.f32 %v2653_v43 }
 0x160   : > { %v1937_v35 = vpop.eup %1936  ;;  %v821_v7 = vadd.f32 1.0, %v1935_v6 }
 0x161   : > { %1952 = vpow2.f32 %v1664_v33  ;;  %912 = vadd.xlane.f32.xlu0 %v888_v34  ;;  %v866_v36 = vmul.f32 %v1937_v35, %v1933_v32  ;;  %v1939_v28 = vpop.eup %1938 }
 0x162   : > { %1954 = vrcp.f32 %v821_v7 }
 0x163   : > { %v1941_v37 = vpop.eup %1940  ;;  %v889_v38 = vmul.f32 %v2624_v27, %v866_v36  ;;  %1956 = vtanh.f32 %v729_v58 }
 0x164   : > { %v1943_v39 = vpop.eup %1942  ;;  %v822_v26 = vadd.f32 1.0, %v1941_v37 }
 0x165   : > { %914 = vadd.xlane.f32.xlu1 %v889_v38  ;;  %v867_v40 = vmul.f32 %v1943_v39, %v1939_v28  ;;  %v1945_v41 = vpop.eup %1944 }
 0x166   : > { %1958 = vrcp.f32 %v822_v26 }
 0x167   : > { %v1947_v44 = vpop.eup %1946  ;;  %v890_v45 = vmul.f32 %v2624_v27, %v867_v40  ;;  %1960 = vtanh.f32 %v735_v12 }
 0x168   : > { %v1949_v43 = vpop.eup %1948  ;;  %v823_v46 = vadd.f32 1.0, %v1947_v44 }
 0x169   : > { %916 = vadd.xlane.f32.xlu0 %v890_v45  ;;  %v868_v47 = vmul.f32 %v1949_v43, %v1945_v41  ;;  %v1951_v48 = vpop.eup %1950 }
 0x16a   : > { %1962 = vrcp.f32 %v823_v46 }
 0x16b   : > { %v1953_v49 = vpop.eup %1952  ;;  %v891_v50 = vmul.f32 %v2624_v27, %v868_v47  ;;  %1964 = vtanh.f32 %v741_v29 }
 0x16c   : > { %v1955_v51 = vpop.eup %1954  ;;  %v824_v53 = vadd.f32 1.0, %v1953_v49 }
 0x16d   : > { %918 = vadd.xlane.f32.xlu1 %v891_v50  ;;  %v869_v54 = vmul.f32 %v1955_v51, %v1951_v48  ;;  %v1957_v52 = vpop.eup %1956 }
 0x16e   : > { %1966 = vrcp.f32 %v824_v53 }
 0x16f   : > { %v892_v42 = vmul.f32 %v2624_v27, %v869_v54 }
 0x170   : > { %v1959_v55 = vpop.eup %1958 }
 0x171   : > { %920 = vadd.xlane.f32.xlu0 %v892_v42  ;;  %v870_v56 = vmul.f32 %v1959_v55, %v1957_v52  ;;  %v1961_v58 = vpop.eup %1960 }
 0x173   : > { %v893_v59 = vmul.f32 %v2624_v27, %v870_v56 }
 0x174   : > { %v1963_v60 = vpop.eup %1962 }
 0x175   : > { %922 = vadd.xlane.f32.xlu1 %v893_v59  ;;  %v871_v61 = vmul.f32 %v1963_v60, %v1961_v58  ;;  %v1965_v62 = vpop.eup %1964 }
 0x177   : > { %v894_v0 = vmul.f32 %v2624_v27, %v871_v61 }
 0x178   : > { %v1967_v1 = vpop.eup %1966 }
 0x179   : > { %924 = vadd.xlane.f32.xlu0 %v894_v0  ;;  %v872_v3 = vmul.f32 %v1967_v1, %v1965_v62 }
 0x17b   : > { %v895_v4 = vmul.f32 %v2624_v27, %v872_v3 }
 0x17d   : > { %926 = vadd.xlane.f32.xlu1 %v895_v4 }
 0x1ce   : > { %v897_v8 = vpop.xlane.xlu0 %896 }
 0x1cf   : > { %v935_v63 = vadd.f32 %v1666_v5, %v897_v8 }
 0x1d1   : > { %954 = vst.msk [vmem:[%s2680_s10] sm:$0xff] %vm4069_vm0, %v935_v63 }
 0x1d2   : > { %v899_v27 = vpop.xlane.xlu0 %898 }
 0x1d3   : > { %v936_v57 = vadd.f32 %v1666_v5, %v899_v27 }
 0x1d5   : > { %955 = vst.msk [vmem:[%s2680_s10 + $0x8] sm:$0xff] %vm4069_vm0, %v936_v57 }
 0x1d6   : > { %v901_v9 = vpop.xlane.xlu1 %900 }
 0x1d7   : > { %v937_v10 = vadd.f32 %v1666_v5, %v901_v9 }
 0x1d9   : > { %956 = vst.msk [vmem:[%s2680_s10 + $0x10] sm:$0xff] %vm4069_vm0, %v937_v10 }
 0x1da   : > { %v903_v12 = vpop.xlane.xlu1 %902 }
 0x1db   : > { %v938_v14 = vadd.f32 %v1666_v5, %v903_v12 }
 0x1dd   : > { %957 = vst.msk [vmem:[%s2680_s10 + $0x18] sm:$0xff] %vm4069_vm0, %v938_v14 }
 0x1de   : > { %v905_v15 = vpop.xlane.xlu0 %904 }
 0x1df   : > { %v939_v16 = vadd.f32 %v1666_v5, %v905_v15 }
 0x1e1   : > { %958 = vst.msk [vmem:[%s2680_s10 + $0x20] sm:$0xff] %vm4069_vm0, %v939_v16 }
 0x1e2   : > { %v907_v17 = vpop.xlane.xlu1 %906 }
 0x1e3   : > { %v940_v18 = vadd.f32 %v1666_v5, %v907_v17 }
 0x1e5   : > { %959 = vst.msk [vmem:[%s2680_s10 + $0x28] sm:$0xff] %vm4069_vm0, %v940_v18 }
 0x1e6   : > { %v909_v19 = vpop.xlane.xlu0 %908 }
 0x1e7   : > { %v941_v20 = vadd.f32 %v1666_v5, %v909_v19 }
 0x1e9   : > { %960 = vst.msk [vmem:[%s2680_s10 + $0x30] sm:$0xff] %vm4069_vm0, %v941_v20 }
 0x1ea   : > { %v911_v21 = vpop.xlane.xlu1 %910 }
 0x1eb   : > { %v942_v22 = vadd.f32 %v1666_v5, %v911_v21 }
 0x1ed   : > { %961 = vst.msk [vmem:[%s2680_s10 + $0x38] sm:$0xff] %vm4069_vm0, %v942_v22 }
 0x1ee   : > { %v913_v23 = vpop.xlane.xlu0 %912 }
 0x1ef   : > { %v943_v13 = vadd.f32 %v1666_v5, %v913_v23 }
 0x1f1   : > { %962 = vst.msk [vmem:[%s2680_s10 + $0x40] sm:$0xff] %vm4069_vm0, %v943_v13 }
 0x1f2   : > { %v915_v11 = vpop.xlane.xlu1 %914 }
 0x1f3   : > { %v944_v24 = vadd.f32 %v1666_v5, %v915_v11 }
 0x1f5   : > { %963 = vst.msk [vmem:[%s2680_s10 + $0x48] sm:$0xff] %vm4069_vm0, %v944_v24 }
 0x1f6   : > { %v917_v25 = vpop.xlane.xlu0 %916 }
 0x1f7   : > { %v945_v29 = vadd.f32 %v1666_v5, %v917_v25 }
 0x1f9   : > { %964 = vst.msk [vmem:[%s2680_s10 + $0x50] sm:$0xff] %vm4069_vm0, %v945_v29 }
 0x1fa   : > { %v919_v30 = vpop.xlane.xlu1 %918 }
 0x1fb   : > { %v946_v31 = vadd.f32 %v1666_v5, %v919_v30 }
 0x1fd   : > { %965 = vst.msk [vmem:[%s2680_s10 + $0x58] sm:$0xff] %vm4069_vm0, %v946_v31 }
 0x1fe   : > { %v921_v32 = vpop.xlane.xlu0 %920 }
 0x1ff   : > { %v947_v6 = vadd.f32 %v1666_v5, %v921_v32 }
 0x201   : > { %966 = vst.msk [vmem:[%s2680_s10 + $0x60] sm:$0xff] %vm4069_vm0, %v947_v6 }
 0x202   : > { %v923_v33 = vpop.xlane.xlu1 %922 }
 0x203   : > { %v948_v34 = vadd.f32 %v1666_v5, %v923_v33 }
 0x205   : > { %967 = vst.msk [vmem:[%s2680_s10 + $0x68] sm:$0xff] %vm4069_vm0, %v948_v34 }
 0x206   : > { %v925_v35 = vpop.xlane.xlu0 %924 }
 0x207   : > { %v949_v7 = vadd.f32 %v1666_v5, %v925_v35  ;;  %973 = sbr.rel (%p1668_p4) target bundleno = 810 (0x32a), region = 44 }
 0x209   : > { %968 = vst.msk [vmem:[%s2680_s10 + $0x70] sm:$0xff] %vm4069_vm0, %v949_v7 }
 0x20a   : > { %v927_v36 = vpop.xlane.xlu1 %926 }
 0x20b   : > { %v950_v28 = vadd.f32 %v1666_v5, %v927_v36 }
 0x20d   : > { %969 = vst.msk [vmem:[%s2680_s10 + $0x78] sm:$0xff] %vm4069_vm0, %v950_v28 }
 0x20e   : > { %s974_s11 = sld [smem:[#allocation3]]  ;;  %v2716_v37 = vadd.s32 8, %v2588_v2  ;;  %v2719_v38 = vadd.s32 16, %v2588_v2  ;;  %v2722_v39 = vadd.s32 24, %v2588_v2  ;;  %v2725_v26 = vadd.s32 32, %v2588_v2 }
 0x20f   : > { %v2728_v40 = vadd.s32 40, %v2588_v2  ;;  %v2731_v41 = vadd.s32 48, %v2588_v2  ;;  %v2734_v44 = vadd.s32 56, %v2588_v2  ;;  %v2737_v45 = vadd.s32 64, %v2588_v2 }
 0x210   : > { %v2740_v43 = vadd.s32 72, %v2588_v2  ;;  %v2743_v46 = vadd.s32 80, %v2588_v2  ;;  %v2746_v47 = vadd.s32 88, %v2588_v2  ;;  %v2749_v48 = vadd.s32 96, %v2588_v2 }
 0x211   : > { %v2752_v49 = vadd.s32 104, %v2588_v2  ;;  %v2755_v50 = vadd.s32 112, %v2588_v2  ;;  %v2758_v51 = vadd.s32 120, %v2588_v2  ;;  %v2761_v53 = vadd.s32 128, %v2588_v2 }
 0x212   : > { %v2764_v54 = vadd.s32 136, %v2588_v2  ;;  %v2767_v52 = vadd.s32 144, %v2588_v2  ;;  %v2770_v42 = vadd.s32 152, %v2588_v2  ;;  %v2775_v56 = vadd.s32 160, %v2588_v2 }
 0x213   : > { %v2778_v58 = vadd.s32 168, %v2588_v2  ;;  %v2781_v59 = vadd.s32 176, %v2588_v2  ;;  %v2784_v60 = vadd.s32 184, %v2588_v2  ;;  %v2787_v61 = vadd.s32 192, %v2588_v2 }
 0x214   : > { %v2772_v55 = vstv %s974_s11  ;;  %v2790_v62 = vadd.s32 200, %v2588_v2  ;;  %v2793_v0 = vadd.s32 208, %v2588_v2  ;;  %v2796_v1 = vadd.s32 216, %v2588_v2  ;;  %v975_v13 = vld [vmem:[%s4068_s6] sm:$0xff]  ;;  %v976_v11 = vld [vmem:[%s4068_s6 + $0x8] sm:$0xff]  ;;  %v977_v24 = vld [vmem:[%s4068_s6 + $0x10] sm:$0xff] }
 0x215   : > { %v2799_v3 = vadd.s32 224, %v2588_v2  ;;  %v2802_v4 = vadd.s32 232, %v2588_v2  ;;  %v2805_v5 = vadd.s32 240, %v2588_v2  ;;  %v2808_v8 = vadd.s32 248, %v2588_v2  ;;  %v978_v25 = vld [vmem:[%s4068_s6 + $0x18] sm:$0xff]  ;;  %v979_v29 = vld [vmem:[%s4068_s6 + $0x20] sm:$0xff] }
 0x216   : > { %v2811_v63 = vadd.s32 256, %v2588_v2  ;;  %v2814_v27 = vadd.s32 264, %v2588_v2  ;;  %v2817_v57 = vadd.s32 272, %v2588_v2  ;;  %v2820_v9 = vadd.s32 280, %v2588_v2  ;;  %v980_v30 = vld [vmem:[%s4068_s6 + $0x28] sm:$0xff]  ;;  %v981_v31 = vld [vmem:[%s4068_s6 + $0x30] sm:$0xff] }
 0x217   : > { %v2823_v10 = vadd.s32 288, %v2588_v2  ;;  %v2826_v12 = vadd.s32 296, %v2588_v2  ;;  %v2829_v14 = vadd.s32 304, %v2588_v2  ;;  %v2832_v15 = vadd.s32 312, %v2588_v2  ;;  %v982_v32 = vld [vmem:[%s4068_s6 + $0x38] sm:$0xff]  ;;  %v983_v6 = vld [vmem:[%s4068_s6 + $0x40] sm:$0xff] }
 0x218   : > { %4091 = vst [vmem:[#allocation5_spill] sm:$0xff] %v2814_v27  ;;  %4092 = vst [vmem:[#allocation6_spill] sm:$0xff] %v2817_v57  ;;  %v2835_v16 = vadd.s32 320, %v2588_v2  ;;  %v2838_v17 = vadd.s32 328, %v2588_v2  ;;  %v2841_v18 = vadd.s32 336, %v2588_v2  ;;  %v2844_v19 = vadd.s32 344, %v2588_v2 }
 0x219   : > { %4093 = vst [vmem:[#allocation7_spill] sm:$0xff] %v2820_v9  ;;  %4094 = vst [vmem:[#allocation8_spill] sm:$0xff] %v2823_v10  ;;  %vm1073_vm1 = vcmp.lt.s32.totalorder %v2588_v2, %v2772_v55  ;;  %vm1074_vm2 = vcmp.lt.s32.totalorder %v2716_v37, %v2772_v55  ;;  %vm1075_vm3 = vcmp.lt.s32.totalorder %v2719_v38, %v2772_v55  ;;  %v2855_v20 = vadd.s32 352, %v2588_v2  ;;  %v984_v33 = vld [vmem:[%s4068_s6 + $0x48] sm:$0xff]  ;;  %v985_v34 = vld [vmem:[%s4068_s6 + $0x50] sm:$0xff] }
 0x21a   : > { %4095 = vst [vmem:[#allocation9_spill] sm:$0xff] %v2826_v12  ;;  %4096 = vst [vmem:[#allocation10_spill] sm:$0xff] %v2829_v14  ;;  %vm1076_vm4 = vcmp.lt.s32.totalorder %v2722_v39, %v2772_v55  ;;  %v2858_v21 = vadd.s32 360, %v2588_v2  ;;  %v2861_v22 = vadd.s32 368, %v2588_v2  ;;  %vm1077_vm5 = vcmp.lt.s32.totalorder %v2725_v26, %v2772_v55  ;;  %v986_v35 = vld [vmem:[%s4068_s6 + $0x58] sm:$0xff]  ;;  %v987_v7 = vld [vmem:[%s4068_s6 + $0x60] sm:$0xff] }
 0x21b   : > { %4097 = vst [vmem:[#allocation11_spill] sm:$0xff] %v2832_v15  ;;  %4098 = vst [vmem:[#allocation12_spill] sm:$0xff] %v2835_v16  ;;  %vm1078_vm6 = vcmp.lt.s32.totalorder %v2728_v40, %v2772_v55  ;;  %vm1079_vm7 = vcmp.lt.s32.totalorder %v2731_v41, %v2772_v55  ;;  %vm1080_vm8 = vcmp.lt.s32.totalorder %v2734_v44, %v2772_v55  ;;  %v2872_v23 = vadd.s32 376, %v2588_v2  ;;  %v988_v36 = vld [vmem:[%s4068_s6 + $0x68] sm:$0xff]  ;;  %v989_v28 = vld [vmem:[%s4068_s6 + $0x70] sm:$0xff] }
 0x21c   : > { %4099 = vst [vmem:[#allocation13_spill] sm:$0xff] %v2838_v17  ;;  %4100 = vst [vmem:[#allocation14_spill] sm:$0xff] %v2841_v18  ;;  %vm1081_vm9 = vcmp.lt.s32.totalorder %v2737_v45, %v2772_v55  ;;  %vm1090_vm11 = vcmp.lt.s32.totalorder %v2764_v54, %v2772_v55  ;;  %vm1091_vm12 = vcmp.lt.s32.totalorder %v2767_v52, %v2772_v55  ;;  %v990_v27 = vld [vmem:[%s4068_s6 + $0x78] sm:$0xff]  ;;  %v991_v9 = vld [vmem:[%s4068_s6 + $0x80] sm:$0xff]  ;;  %v3034_v18 = vsel %vm1074_vm2, %v976_v11, -inf }
 0x21d   : > { %4101 = vst [vmem:[#allocation15_spill] sm:$0xff] %v2844_v19  ;;  %4102 = vst [vmem:[#allocation16_spill] sm:$0xff] %v2858_v21  ;;  %vm1092_vm13 = vcmp.lt.s32.totalorder %v2770_v42, %v2772_v55  ;;  %v992_v57 = vld [vmem:[%s4068_s6 + $0x88] sm:$0xff]  ;;  %v993_v10 = vld [vmem:[%s4068_s6 + $0x90] sm:$0xff]  ;;  %vm1117_vm15 = vcmp.lt.s32.totalorder %v2855_v20, %v2772_v55  ;;  %vm1118_vm14 = vcmp.lt.s32.totalorder %v2858_v21, %v2772_v55  ;;  %v3029_v19 = vsel %vm1073_vm1, %v975_v13, -inf }
 0x21e   : > { %4103 = vst [vmem:[#allocation17_spill] sm:$0xff] %v2861_v22  ;;  %v994_v12 = vld [vmem:[%s4068_s6 + $0x98] sm:$0xff]  ;;  %v995_v15 = vld [vmem:[%s4068_s6 + $0xa0] sm:$0xff]  ;;  %v996_v14 = vld [vmem:[%s4068_s6 + $0xa8] sm:$0xff]  ;;  %vm1119_vm10 = vcmp.lt.s32.totalorder %v2861_v22, %v2772_v55  ;;  %vm1120_vm0 = vcmp.lt.s32.totalorder %v2872_v23, %v2772_v55  ;;  %v3039_v21 = vsel %vm1075_vm3, %v977_v24, -inf  ;;  %v3044_v22 = vsel %vm1076_vm4, %v978_v25, -inf }
 0x21f   : > { %v997_v16 = vld [vmem:[%s4068_s6 + $0xb0] sm:$0xff]  ;;  %v998_v17 = vld [vmem:[%s4068_s6 + $0xb8] sm:$0xff]  ;;  %v999_v2 = vld [vmem:[%s4068_s6 + $0xc0] sm:$0xff]  ;;  %v3061_v39 = vsel %vm1077_vm5, %v979_v29, -inf  ;;  %v3066_v11 = vsel %vm1078_vm6, %v980_v30, -inf  ;;  %v3071_v24 = vsel %vm1079_vm7, %v981_v31, -inf  ;;  %vm4108_vm1 = vcmp.lt.s32.totalorder %v2740_v43, %v2772_v55 }
 0x220   : > { %v1000_v37 = vld [vmem:[%s4068_s6 + $0xc8] sm:$0xff]  ;;  %v1001_v13 = vld [vmem:[%s4068_s6 + $0xd0] sm:$0xff]  ;;  %v1002_v38 = vld [vmem:[%s4068_s6 + $0xd8] sm:$0xff]  ;;  %4104 = vst [vmem:[#allocation18_spill] sm:$0xff] %v3061_v39  ;;  %v3076_v25 = vsel %vm1080_vm8, %v982_v32, -inf  ;;  %v3093_v44 = vsel %vm1081_vm9, %v983_v6, -inf  ;;  %vm4109_vm2 = vcmp.lt.s32.totalorder %v2743_v46, %v2772_v55  ;;  %vm4110_vm3 = vcmp.lt.s32.totalorder %v2746_v47, %v2772_v55 }
 0x221   : > { %4105 = vst [vmem:[#allocation19_spill] sm:$0xff] %v3066_v11  ;;  %4106 = vst [vmem:[#allocation20_spill] sm:$0xff] %v3071_v24  ;;  %v1003_v26 = vld [vmem:[%s4068_s6 + $0xe0] sm:$0xff]  ;;  %v1004_v40 = vld [vmem:[%s4068_s6 + $0xe8] sm:$0xff]  ;;  %v3098_v30 = vsel %vm4108_vm1, %v984_v33, -inf  ;;  %v3103_v31 = vsel %vm4109_vm2, %v985_v34, -inf  ;;  %vm4111_vm4 = vcmp.lt.s32.totalorder %v2749_v48, %v2772_v55  ;;  %vm4112_vm5 = vcmp.lt.s32.totalorder %v2752_v49, %v2772_v55 }
 0x222   : > { %4107 = vst [vmem:[#allocation21_spill] sm:$0xff] %v3076_v25  ;;  %v1005_v29 = vld [vmem:[%s4068_s6 + $0xf0] sm:$0xff]  ;;  %v1006_v41 = vld [vmem:[%s4068_s6 + $0xf8] sm:$0xff]  ;;  %v3108_v32 = vsel %vm4110_vm3, %v986_v35, -inf  ;;  %v1007_v45 = vld [vmem:[%s4068_s6 + $0x100] sm:$0xff]  ;;  %v3125_v47 = vsel %vm4111_vm4, %v987_v7, -inf  ;;  %vm4113_vm6 = vcmp.lt.s32.totalorder %v2755_v50, %v2772_v55  ;;  %vm4114_vm7 = vcmp.lt.s32.totalorder %v2758_v51, %v2772_v55 }
 0x223   : > { %v1008_v43 = vld [vmem:[%s4068_s6 + $0x108] sm:$0xff]  ;;  %v1009_v6 = vld [vmem:[%s4068_s6 + $0x110] sm:$0xff]  ;;  %v1010_v46 = vld [vmem:[%s4068_s6 + $0x118] sm:$0xff]  ;;  %v3130_v33 = vsel %vm4112_vm5, %v988_v36, -inf  ;;  %v3135_v34 = vsel %vm4113_vm6, %v989_v28, -inf  ;;  %v3140_v35 = vsel %vm4114_vm7, %v990_v27, -inf  ;;  %vm4115_vm8 = vcmp.lt.s32.totalorder %v2761_v53, %v2772_v55 }
 0x224   : > { %v1011_v48 = vld [vmem:[%s4068_s6 + $0x120] sm:$0xff]  ;;  %v1012_v49 = vld [vmem:[%s4068_s6 + $0x128] sm:$0xff]  ;;  %v1013_v7 = vld [vmem:[%s4068_s6 + $0x130] sm:$0xff]  ;;  %v3157_v51 = vsel %vm4115_vm8, %v991_v9, -inf  ;;  %v3162_v27 = vsel %vm1090_vm11, %v992_v57, -inf  ;;  %v3167_v36 = vsel %vm1091_vm12, %v993_v10, -inf  ;;  %vm4116_vm9 = vcmp.lt.s32.totalorder %v2775_v56, %v2772_v55 }
 0x225   : > { %v1014_v50 = vld [vmem:[%s4068_s6 + $0x138] sm:$0xff]  ;;  %v3172_v28 = vsel %vm1092_vm13, %v994_v12, -inf  ;;  %v1015_v53 = vld [vmem:[%s4068_s6 + $0x140] sm:$0xff]  ;;  %v1016_v54 = vld [vmem:[%s4068_s6 + $0x148] sm:$0xff]  ;;  %v3183_v57 = vsel %vm4116_vm9, %v995_v15, -inf  ;;  %vm4117_vm11 = vcmp.lt.s32.totalorder %v2778_v58, %v2772_v55  ;;  %vm4118_vm12 = vcmp.lt.s32.totalorder %v2781_v59, %v2772_v55 }
 0x226   : > { %v3188_v52 = vsel %vm4117_vm11, %v996_v14, -inf  ;;  %v3193_v42 = vsel %vm4118_vm12, %v997_v16, -inf  ;;  %vm4119_vm13 = vcmp.lt.s32.totalorder %v2784_v60, %v2772_v55  ;;  %v1017_v56 = vld [vmem:[%s4068_s6 + $0x150] sm:$0xff]  ;;  %v1018_v58 = vld [vmem:[%s4068_s6 + $0x158] sm:$0xff]  ;;  %vm4120_vm1 = vcmp.lt.s32.totalorder %v2787_v61, %v2772_v55  ;;  %v1019_v61 = vld [vmem:[%s4068_s6 + $0x160] sm:$0xff] }
 0x227   : > { %v3198_v9 = vsel %vm4119_vm13, %v998_v17, -inf  ;;  %v3209_v10 = vsel %vm4120_vm1, %v999_v2, -inf  ;;  %vm4121_vm2 = vcmp.lt.s32.totalorder %v2790_v62, %v2772_v55  ;;  %vm4122_vm3 = vcmp.lt.s32.totalorder %v2793_v0, %v2772_v55  ;;  %v1020_v62 = vld [vmem:[%s4068_s6 + $0x168] sm:$0xff] }
 0x228   : > { %v3214_v59 = vsel %vm4121_vm2, %v1000_v37, -inf  ;;  %v3219_v60 = vsel %vm4122_vm3, %v1001_v13, -inf  ;;  %vm4123_vm4 = vcmp.lt.s32.totalorder %v2796_v1, %v2772_v55  ;;  %vm4124_vm5 = vcmp.lt.s32.totalorder %v2799_v3, %v2772_v55  ;;  %v1021_v3 = vld [vmem:[%s4068_s6 + $0x170] sm:$0xff] }
 0x229   : > { %v3224_v12 = vsel %vm4123_vm4, %v1002_v38, -inf  ;;  %v3235_v14 = vsel %vm4124_vm5, %v1003_v26, -inf  ;;  %vm4125_vm6 = vcmp.lt.s32.totalorder %v2802_v4, %v2772_v55  ;;  %vm4126_vm7 = vcmp.lt.s32.totalorder %v2805_v5, %v2772_v55  ;;  %v1022_v4 = vld [vmem:[%s4068_s6 + $0x178] sm:$0xff]  ;;  %v4132_v5 = vld [vmem:[#allocation5_spill] sm:$0xff] }
 0x22a   : > { %v3240_v0 = vsel %vm4125_vm6, %v1004_v40, -inf  ;;  %v3245_v1 = vsel %vm4126_vm7, %v1005_v29, -inf  ;;  %vm4128_vm8 = vcmp.lt.s32.totalorder %v2808_v8, %v2772_v55  ;;  %vm4130_vm9 = vcmp.lt.s32.totalorder %v2811_v63, %v2772_v55  ;;  %v4134_v8 = vld [vmem:[#allocation6_spill] sm:$0xff]  ;;  %v4136_v37 = vld [vmem:[#allocation7_spill] sm:$0xff]  ;;  %v4138_v38 = vld [vmem:[#allocation8_spill] sm:$0xff] }
 0x22b   : > { %4127 = vst [vmem:[#allocation22_spill] sm:$0xff] %v3245_v1  ;;  %v3250_v15 = vsel %vm4128_vm8, %v1006_v41, -inf  ;;  %v3261_v16 = vsel %vm4130_vm9, %v1007_v45, -inf  ;;  %vm4133_vm11 = vcmp.lt.s32.totalorder %v4132_v5, %v2772_v55  ;;  %vm4135_vm12 = vcmp.lt.s32.totalorder %v4134_v8, %v2772_v55  ;;  %v4140_v26 = vld [vmem:[#allocation9_spill] sm:$0xff]  ;;  %v4142_v29 = vld [vmem:[#allocation10_spill] sm:$0xff]  ;;  %v4144_v45 = vld [vmem:[#allocation11_spill] sm:$0xff] }
 0x22c   : > { %4129 = vst [vmem:[#allocation23_spill] sm:$0xff] %v3250_v15  ;;  %4131 = vst [vmem:[#allocation24_spill] sm:$0xff] %v3261_v16  ;;  %v3266_v17 = vsel %vm4133_vm11, %v1008_v43, -inf  ;;  %v3271_v2 = vsel %vm4135_vm12, %v1009_v6, -inf  ;;  %vm4137_vm13 = vcmp.lt.s32.totalorder %v4136_v37, %v2772_v55  ;;  %vm4139_vm1 = vcmp.lt.s32.totalorder %v4138_v38, %v2772_v55  ;;  %v4146_v6 = vld [vmem:[#allocation12_spill] sm:$0xff]  ;;  %v4150_v5 = vld [vmem:[#allocation14_spill] sm:$0xff] }
 0x22d   : > { %v3276_v13 = vsel %vm4137_vm13, %v1010_v46, -inf  ;;  %v3281_v63 = vsel %vm4139_vm1, %v1011_v48, -inf  ;;  %vm4141_vm2 = vcmp.lt.s32.totalorder %v4140_v26, %v2772_v55  ;;  %vm4143_vm3 = vcmp.lt.s32.totalorder %v4142_v29, %v2772_v55  ;;  %v4148_v48 = vld [vmem:[#allocation13_spill] sm:$0xff]  ;;  %v4152_v8 = vld [vmem:[#allocation15_spill] sm:$0xff] }
 0x22e   : > { %v3286_v40 = vsel %vm4141_vm2, %v1012_v49, -inf  ;;  %v3291_v41 = vsel %vm4143_vm3, %v1013_v7, -inf  ;;  %vm4145_vm4 = vcmp.lt.s32.totalorder %v4144_v45, %v2772_v55  ;;  %vm4147_vm5 = vcmp.lt.s32.totalorder %v4146_v6, %v2772_v55 }
 0x22f   : > { %v3296_v43 = vsel %vm4145_vm4, %v1014_v50, -inf  ;;  %v3301_v46 = vsel %vm4147_vm5, %v1015_v53, -inf  ;;  %vm4149_vm6 = vcmp.lt.s32.totalorder %v4148_v48, %v2772_v55  ;;  %vm4151_vm7 = vcmp.lt.s32.totalorder %v4150_v5, %v2772_v55 }
 0x230   : > { %v3306_v49 = vsel %vm4149_vm6, %v1016_v54, -inf  ;;  %v3311_v7 = vsel %vm4151_vm7, %v1017_v56, -inf  ;;  %vm4153_vm8 = vcmp.lt.s32.totalorder %v4152_v8, %v2772_v55  ;;  %v3321_v53 = vsel %vm1117_vm15, %v1019_v61, -inf }
 0x231   : > { %v3316_v50 = vsel %vm4153_vm8, %v1018_v58, -inf  ;;  %v3326_v54 = vsel %vm1118_vm14, %v1020_v62, -inf  ;;  %v3331_v56 = vsel %vm1119_vm10, %v1021_v3, -inf  ;;  %v3336_v58 = vsel %vm1120_vm0, %v1022_v4, -inf }
 0x232   : > { %vm4156_vm9 = vcmask 7168  }
 0x233   : > { %v1169_v20 = vsel %vm4156_vm9, %v3029_v19, -inf  ;;  %vm4157_vm15 = vmmov %vm4156_vm9 }
 0x234   : > { %v1170_v61 = vsel %vm4157_vm15, %v3034_v18, -inf  ;;  %vm4158_vm11 = vmmov %vm4156_vm9 }
 0x235   : > { %v1171_v62 = vsel %vm4158_vm11, %v3039_v21, -inf  ;;  %vm4159_vm14 = vmmov %vm4156_vm9 }
 0x236   : > { %v1172_v26 = vsel %vm4159_vm14, %v3044_v22, -inf  ;;  %vm4160_vm10 = vmmov %vm4156_vm9 }
 0x237   : > { %v1173_v3 = vsel %vm4160_vm10, %v3061_v39, -inf  ;;  %vm4161_vm12 = vmmov %vm4156_vm9 }
 0x238   : > { %v1175_v55 = vsel %vm4161_vm12, %v3066_v11, -inf  ;;  %vm4162_vm0 = vmmov %vm4156_vm9  ;;  %v1174_v29 = vmax.f32 %v1169_v20, %v1173_v3 }
 0x239   : > { %v1177_v23 = vsel %vm4162_vm0, %v3071_v24, -inf  ;;  %vm4163_vm13 = vmmov %vm4162_vm0  ;;  %v1176_v45 = vmax.f32 %v1170_v61, %v1175_v55 }
 0x23a   : > { %v1179_v4 = vsel %vm4163_vm13, %v3076_v25, -inf  ;;  %v1178_v6 = vmax.f32 %v1171_v62, %v1177_v23  ;;  %vm4164_vm1 = vmmov %vm4162_vm0 }
 0x23b   : > { %v1180_v48 = vmax.f32 %v1172_v26, %v1179_v4  ;;  %v1181_v5 = vsel %vm4164_vm1, %v3093_v44, -inf  ;;  %vm4165_vm2 = vmmov %vm4162_vm0 }
 0x23c   : > { %v1183_v8 = vsel %vm4165_vm2, %v3098_v30, -inf  ;;  %vm4166_vm3 = vmmov %vm4162_vm0  ;;  %v1182_v24 = vmax.f32 %v1174_v29, %v1181_v5 }
 0x23d   : > { %v1185_v37 = vsel %vm4166_vm3, %v3103_v31, -inf  ;;  %vm4167_vm4 = vmmov %vm4162_vm0  ;;  %v1184_v11 = vmax.f32 %v1176_v45, %v1183_v8 }
 0x23e   : > { %v1187_v38 = vsel %vm4167_vm4, %v3108_v32, -inf  ;;  %v1186_v39 = vmax.f32 %v1178_v6, %v1185_v37  ;;  %vm4168_vm5 = vmmov %vm4162_vm0 }
 0x23f   : > { %v1188_v25 = vmax.f32 %v1180_v48, %v1187_v38  ;;  %v1189_v20 = vsel %vm4168_vm5, %v3125_v47, -inf  ;;  %vm4169_vm6 = vmmov %vm4162_vm0 }
 0x240   : > { %v1191_v61 = vsel %vm4169_vm6, %v3130_v33, -inf  ;;  %vm4170_vm7 = vmmov %vm4162_vm0  ;;  %v1190_v3 = vmax.f32 %v1182_v24, %v1189_v20  ;;  %v1209_v24 = vsel %vm4162_vm0, %v3193_v42, -inf }
 0x241   : > { %v1193_v62 = vsel %vm4170_vm7, %v3135_v34, -inf  ;;  %vm4171_vm8 = vmmov %vm4162_vm0  ;;  %v1192_v55 = vmax.f32 %v1184_v11, %v1191_v61 }
 0x242   : > { %v1195_v26 = vsel %vm4171_vm8, %v3140_v35, -inf  ;;  %v1194_v23 = vmax.f32 %v1186_v39, %v1193_v62  ;;  %vm4172_vm9 = vmmov %vm4162_vm0 }
 0x243   : > { %v1196_v4 = vmax.f32 %v1188_v25, %v1195_v26  ;;  %v1197_v29 = vsel %vm4172_vm9, %v3157_v51, -inf  ;;  %vm4173_vm15 = vmmov %vm4162_vm0 }
 0x244   : > { %v1199_v45 = vsel %vm4173_vm15, %v3162_v27, -inf  ;;  %vm4174_vm11 = vmmov %vm4162_vm0  ;;  %v1198_v5 = vmax.f32 %v1190_v3, %v1197_v29 }
 0x245   : > { %v1201_v6 = vsel %vm4174_vm11, %v3167_v36, -inf  ;;  %vm4175_vm14 = vmmov %vm4162_vm0  ;;  %v1200_v8 = vmax.f32 %v1192_v55, %v1199_v45 }
 0x246   : > { %v1203_v48 = vsel %vm4175_vm14, %v3172_v28, -inf  ;;  %v1202_v37 = vmax.f32 %v1194_v23, %v1201_v6  ;;  %vm4176_vm10 = vmmov %vm4162_vm0 }
 0x247   : > { %v1204_v38 = vmax.f32 %v1196_v4, %v1203_v48  ;;  %v1205_v39 = vsel %vm4176_vm10, %v3183_v57, -inf  ;;  %vm4177_vm12 = vmmov %vm4162_vm0 }
 0x248   : > { %v1207_v11 = vsel %vm4177_vm12, %v3188_v52, -inf  ;;  %vm4178_vm13 = vmmov %vm4162_vm0  ;;  %v1206_v20 = vmax.f32 %v1198_v5, %v1205_v39  ;;  %v1210_v62 = vmax.f32 %v1202_v37, %v1209_v24 }
 0x249   : > { %v1211_v25 = vsel %vm4178_vm13, %v3198_v9, -inf  ;;  %v1208_v61 = vmax.f32 %v1200_v8, %v1207_v11  ;;  %vm4179_vm1 = vmmov %vm4162_vm0 }
 0x24a   : > { %v1212_v26 = vmax.f32 %v1204_v38, %v1211_v25  ;;  %v1213_v3 = vsel %vm4179_vm1, %v3209_v10, -inf  ;;  %vm4180_vm2 = vmmov %vm4162_vm0 }
 0x24b   : > { %v1215_v55 = vsel %vm4180_vm2, %v3214_v59, -inf  ;;  %vm4181_vm3 = vmmov %vm4162_vm0  ;;  %v1214_v29 = vmax.f32 %v1206_v20, %v1213_v3 }
 0x24c   : > { %v1217_v23 = vsel %vm4181_vm3, %v3219_v60, -inf  ;;  %vm4182_vm4 = vmmov %vm4162_vm0  ;;  %v1216_v45 = vmax.f32 %v1208_v61, %v1215_v55 }
 0x24d   : > { %v1219_v4 = vsel %vm4182_vm4, %v3224_v12, -inf  ;;  %v1218_v6 = vmax.f32 %v1210_v62, %v1217_v23  ;;  %vm4183_vm5 = vmmov %vm4162_vm0 }
 0x24e   : > { %v1220_v48 = vmax.f32 %v1212_v26, %v1219_v4  ;;  %v1221_v5 = vsel %vm4183_vm5, %v3235_v14, -inf  ;;  %vm4184_vm6 = vmmov %vm4162_vm0 }
 0x24f   : > { %v1223_v8 = vsel %vm4184_vm6, %v3240_v0, -inf  ;;  %vm4185_vm7 = vmmov %vm4162_vm0  ;;  %v1222_v39 = vmax.f32 %v1214_v29, %v1221_v5 }
 0x250   : > { %v1225_v37 = vsel %vm4185_vm7, %v3245_v1, -inf  ;;  %vm4186_vm8 = vmmov %vm4162_vm0  ;;  %v1224_v11 = vmax.f32 %v1216_v45, %v1223_v8 }
 0x251   : > { %v1227_v38 = vsel %vm4186_vm8, %v3250_v15, -inf  ;;  %v1226_v24 = vmax.f32 %v1218_v6, %v1225_v37  ;;  %vm4187_vm9 = vmmov %vm4162_vm0  ;;  %v1241_v6 = vsel %vm4162_vm0, %v3291_v41, -inf }
 0x252   : > { %v1228_v25 = vmax.f32 %v1220_v48, %v1227_v38  ;;  %v1229_v20 = vsel %vm4187_vm9, %v3261_v16, -inf  ;;  %vm4188_vm15 = vmmov %vm4162_vm0 }
 0x253   : > { %v1231_v61 = vsel %vm4188_vm15, %v3266_v17, -inf  ;;  %vm4189_vm11 = vmmov %vm4162_vm0  ;;  %v1230_v3 = vmax.f32 %v1222_v39, %v1229_v20 }
 0x254   : > { %v1233_v62 = vsel %vm4189_vm11, %v3271_v2, -inf  ;;  %vm4190_vm14 = vmmov %vm4162_vm0  ;;  %v1232_v55 = vmax.f32 %v1224_v11, %v1231_v61 }
 0x255   : > { %v1235_v26 = vsel %vm4190_vm14, %v3276_v13, -inf  ;;  %v1234_v23 = vmax.f32 %v1226_v24, %v1233_v62  ;;  %vm4191_vm10 = vmmov %vm4162_vm0 }
 0x256   : > { %v1236_v4 = vmax.f32 %v1228_v25, %v1235_v26  ;;  %v1237_v29 = vsel %vm4191_vm10, %v3281_v63, -inf  ;;  %vm4192_vm12 = vmmov %vm4162_vm0 }
 0x257   : > { %v1239_v45 = vsel %vm4192_vm12, %v3286_v40, -inf  ;;  %vm4193_vm13 = vmmov %vm4162_vm0  ;;  %v1238_v5 = vmax.f32 %v1230_v3, %v1237_v29  ;;  %v1242_v37 = vmax.f32 %v1234_v23, %v1241_v6 }
 0x258   : > { %v1243_v48 = vsel %vm4193_vm13, %v3296_v43, -inf  ;;  %v1240_v8 = vmax.f32 %v1232_v55, %v1239_v45  ;;  %vm4194_vm1 = vmmov %vm4162_vm0 }
 0x259   : > { %v1244_v38 = vmax.f32 %v1236_v4, %v1243_v48  ;;  %v1245_v39 = vsel %vm4194_vm1, %v3301_v46, -inf  ;;  %vm4195_vm2 = vmmov %vm4162_vm0 }
 0x25a   : > { %v1247_v11 = vsel %vm4195_vm2, %v3306_v49, -inf  ;;  %vm4196_vm3 = vmmov %vm4162_vm0  ;;  %v1246_v20 = vmax.f32 %v1238_v5, %v1245_v39 }
 0x25b   : > { %v1249_v24 = vsel %vm4196_vm3, %v3311_v7, -inf  ;;  %vm4197_vm4 = vmmov %vm4162_vm0  ;;  %v1248_v61 = vmax.f32 %v1240_v8, %v1247_v11 }
 0x25c   : > { %v1251_v25 = vsel %vm4197_vm4, %v3316_v50, -inf  ;;  %v1250_v62 = vmax.f32 %v1242_v37, %v1249_v24  ;;  %vm4198_vm5 = vmmov %vm4162_vm0 }
 0x25d   : > { %v1252_v26 = vmax.f32 %v1244_v38, %v1251_v25  ;;  %v1253_v3 = vsel %vm4198_vm5, %v3321_v53, -inf  ;;  %vm4199_vm6 = vmmov %vm4162_vm0 }
 0x25e   : > { %v1255_v55 = vsel %vm4199_vm6, %v3326_v54, -inf  ;;  %vm4200_vm7 = vmmov %vm4162_vm0  ;;  %v1254_v29 = vmax.f32 %v1246_v20, %v1253_v3 }
 0x25f   : > { %v1257_v23 = vsel %vm4200_vm7, %v3331_v56, -inf  ;;  %vm4201_vm8 = vmmov %vm4162_vm0  ;;  %v1256_v45 = vmax.f32 %v1248_v61, %v1255_v55 }
 0x260   : > { %v1259_v4 = vsel %vm4201_vm8, %v3336_v58, -inf  ;;  %v1258_v6 = vmax.f32 %v1250_v62, %v1257_v23  ;;  %v4202_v62 = vld [vmem:[#allocation18_spill] sm:$0xff]  ;;  %vm4206_vm9 = vmmov %vm4162_vm0 }
 0x261   : > { %v1260_v48 = vmax.f32 %v1252_v26, %v1259_v4  ;;  %v1261_v5 = vmax.f32 %v1254_v29, %v1256_v45  ;;  %vm4207_vm15 = vmmov %vm4162_vm0 }
 0x262   : > { %vm4208_vm11 = vmmov %vm4162_vm0 }
 0x263   : > { %v1262_v8 = vmax.f32 %v1258_v6, %v1260_v48  ;;  %v4204_v6 = vld [vmem:[#allocation20_spill] sm:$0xff]  ;;  %vm4209_vm14 = vmmov %vm4162_vm0 }
 0x264   : > { %vm4210_vm10 = vmmov %vm4162_vm0 }
 0x265   : > { %v1263_v37 = vmax.f32 %v1261_v5, %v1262_v8  ;;  %v4205_v5 = vld [vmem:[#allocation21_spill] sm:$0xff]  ;;  %vm4211_vm12 = vmmov %vm4162_vm0 }
 0x266   : > { %vm4212_vm13 = vmmov %vm4162_vm0 }
 0x267   : > { %v1264_v38 = vrot.slane %v1263_v37, 4  ;;  %vm4213_vm1 = vmmov %vm4162_vm0 }
 0x268   : > { %vm4214_vm2 = vmmov %vm4162_vm0 }
 0x269   : > { %v1265_v39 = vmax.f32 %v1263_v37, %v1264_v38  ;;  %vm4215_vm3 = vmmov %vm4162_vm0 }
 0x26a   : > { %vm4216_vm4 = vmmov %vm4162_vm0 }
 0x26b   : > { %v1266_v11 = vrot.slane %v1265_v39, 2  ;;  %vm4217_vm5 = vmmov %vm4162_vm0 }
 0x26c   : > { %vm4218_vm6 = vmmov %vm4162_vm0 }
 0x26d   : > { %v1267_v24 = vmax.f32 %v1265_v39, %v1266_v11  ;;  %vm4219_vm7 = vmmov %vm4162_vm0 }
 0x26e   : > { %vm4220_vm8 = vmmov %vm4162_vm0 }
 0x26f   : > { %v1268_v25 = vrot.slane %v1267_v24, 1 }
 0x271   : > { %v3434_v16 = vmax.f32 %v1267_v24, %v1268_v25  ;;  %v4203_v24 = vld [vmem:[#allocation19_spill] sm:$0xff] }
 0x273   : > { %v1270_v15 = vsub.f32 %v3029_v19, %v3434_v16  ;;  %v1271_v1 = vsub.f32 %v3034_v18, %v3434_v16  ;;  %v1272_v20 = vsub.f32 %v3039_v21, %v3434_v16  ;;  %v1273_v61 = vsub.f32 %v3044_v22, %v3434_v16 }
 0x274   : > { %v1274_v26 = vsub.f32 %v4202_v62, %v3434_v16  ;;  %v1303_v3 = vsub.f32 %v3266_v17, %v3434_v16  ;;  %v1304_v55 = vsub.f32 %v3271_v2, %v3434_v16  ;;  %v1305_v19 = vsub.f32 %v3276_v13, %v3434_v16 }
 0x275   : > { %v1306_v18 = vsub.f32 %v3281_v63, %v3434_v16  ;;  %v1307_v21 = vsub.f32 %v3286_v40, %v3434_v16  ;;  %v1318_v38 = vmul.f32 1.442695, %v1270_v15  ;;  %v1320_v39 = vmul.f32 1.442695, %v1271_v1 }
 0x276   : > { %v1322_v11 = vmul.f32 1.442695, %v1272_v20  ;;  %v1275_v25 = vsub.f32 %v4203_v24, %v3434_v16  ;;  %v1324_v62 = vmul.f32 1.442695, %v1273_v61  ;;  %v1276_v48 = vsub.f32 %v4204_v6, %v3434_v16 }
 0x277   : > { %1968 = vpow2.f32 %v1318_v38  ;;  %v1326_v45 = vmul.f32 1.442695, %v1274_v26  ;;  %v1277_v8 = vsub.f32 %v4205_v5, %v3434_v16  ;;  %v1278_v1 = vsub.f32 %v3093_v44, %v3434_v16 }
 0x278   : > { %1970 = vpow2.f32 %v1320_v39  ;;  %v1328_v29 = vmul.f32 1.442695, %v1275_v25  ;;  %v1330_v15 = vmul.f32 1.442695, %v1276_v48  ;;  %v1279_v20 = vsub.f32 %v3098_v30, %v3434_v16 }
 0x279   : > { %1972 = vpow2.f32 %v1322_v11  ;;  %v1332_v61 = vmul.f32 1.442695, %v1277_v8  ;;  %v1280_v6 = vsub.f32 %v3103_v31, %v3434_v16  ;;  %v1334_v26 = vmul.f32 1.442695, %v1278_v1 }
 0x27a   : > { %1974 = vpow2.f32 %v1324_v62  ;;  %v1281_v39 = vsub.f32 %v3108_v32, %v3434_v16  ;;  %v1336_v44 = vmul.f32 1.442695, %v1279_v20  ;;  %v1282_v30 = vsub.f32 %v3125_v47, %v3434_v16 }
 0x27b   : > { %1976 = vpow2.f32 %v1326_v45  ;;  %v1338_v31 = vmul.f32 1.442695, %v1280_v6  ;;  %v1283_v24 = vsub.f32 %v3130_v33, %v3434_v16  ;;  %v1285_v33 = vsub.f32 %v3140_v35, %v3434_v16 }
 0x27c   : > { %1978 = vpow2.f32 %v1328_v29  ;;  %v1340_v25 = vmul.f32 1.442695, %v1281_v39  ;;  %v1342_v20 = vmul.f32 1.442695, %v1282_v30  ;;  %v1287_v35 = vsub.f32 %v3162_v27, %v3434_v16 }
 0x27d   : > { %1980 = vpow2.f32 %v1330_v15  ;;  %v1284_v15 = vsub.f32 %v3135_v34, %v3434_v16  ;;  %v1344_v39 = vmul.f32 1.442695, %v1283_v24  ;;  %v1286_v34 = vsub.f32 %v3157_v51, %v3434_v16 }
 0x27e   : > { %1982 = vpow2.f32 %v1332_v61  ;;  %v1348_v24 = vmul.f32 1.442695, %v1285_v33  ;;  %v1288_v51 = vsub.f32 %v3167_v36, %v3434_v16  ;;  %v1289_v27 = vsub.f32 %v3172_v28, %v3434_v16 }
 0x27f   : > { %1984 = vpow2.f32 %v1334_v26  ;;  %v1346_v30 = vmul.f32 1.442695, %v1284_v15  ;;  %v1350_v15 = vmul.f32 1.442695, %v1286_v34  ;;  %v1352_v33 = vmul.f32 1.442695, %v1287_v35 }
 0x280   : > { %1986 = vpow2.f32 %v1336_v44  ;;  %v1290_v36 = vsub.f32 %v3183_v57, %v3434_v16  ;;  %v1354_v34 = vmul.f32 1.442695, %v1288_v51  ;;  %v1291_v28 = vsub.f32 %v3188_v52, %v3434_v16 }
 0x281   : > { %v3488_v38 = vpop.eup %1968  ;;  %1988 = vpow2.f32 %v1338_v31  ;;  %v1356_v35 = vmul.f32 1.442695, %v1289_v27  ;;  %v1292_v57 = vsub.f32 %v3193_v42, %v3434_v16  ;;  %v1293_v52 = vsub.f32 %v3198_v9, %v3434_v16 }
 0x282   : > { %v3490_v5 = vpop.eup %1970  ;;  %v1414_v29 = vsel %vm4206_vm9, %v3488_v38, 0.0  ;;  %1990 = vpow2.f32 %v1340_v25  ;;  %v1358_v51 = vmul.f32 1.442695, %v1290_v36  ;;  %v1360_v27 = vmul.f32 1.442695, %v1291_v28  ;;  %vm4221_vm9 = vmmov %vm4162_vm0 }
 0x283   : > { %v3494_v45 = vpop.eup %1972  ;;  %v1415_v8 = vsel %vm4207_vm15, %v3490_v5, 0.0  ;;  %1992 = vpow2.f32 %v1342_v20  ;;  %v1294_v42 = vsub.f32 %v3209_v10, %v3434_v16  ;;  %v1362_v36 = vmul.f32 1.442695, %v1292_v57  ;;  %vm4222_vm15 = vmmov %vm4162_vm0 }
 0x284   : > { %v3496_v48 = vpop.eup %1974  ;;  %v1417_v32 = vsel %vm4208_vm11, %v3494_v45, 0.0  ;;  %v1416_v62 = vadd.f32 %v1415_v8, %v1414_v29  ;;  %1994 = vpow2.f32 %v1344_v39  ;;  %v1295_v9 = vsub.f32 %v3214_v59, %v3434_v16  ;;  %vm4223_vm11 = vmmov %vm4162_vm0 }
 0x285   : > { %v3506_v11 = vpop.eup %1976  ;;  %v1419_v47 = vsel %vm4209_vm14, %v3496_v48, 0.0  ;;  %1996 = vpow2.f32 %v1346_v30  ;;  %v1364_v28 = vmul.f32 1.442695, %v1293_v52  ;;  %v1296_v10 = vsub.f32 %v3219_v60, %v3434_v16  ;;  %vm4224_vm14 = vmmov %vm4162_vm0 }
 0x286   : > { %v3512_v1 = vpop.eup %1978  ;;  %v1418_v61 = vadd.f32 %v1417_v32, %v1416_v62  ;;  %v1421_v6 = vsel %vm4210_vm10, %v3506_v11, 0.0  ;;  %1998 = vpow2.f32 %v1348_v24  ;;  %v1366_v57 = vmul.f32 1.442695, %v1294_v42  ;;  %vm4226_vm10 = vmmov %vm4162_vm0 }
 0x287   : > { %v3518_v26 = vpop.eup %1980  ;;  %v1423_v29 = vsel %vm4211_vm12, %v3512_v1, 0.0  ;;  %2000 = vpow2.f32 %v1350_v15  ;;  %v1297_v59 = vsub.f32 %v3224_v12, %v3434_v16  ;;  %v1368_v52 = vmul.f32 1.442695, %v1295_v9  ;;  %vm4228_vm12 = vmmov %vm4162_vm0 }
 0x288   : > { %v1420_v44 = vadd.f32 %v1419_v47, %v1418_v61  ;;  %v3524_v8 = vpop.eup %1982  ;;  %v1425_v32 = vsel %vm4162_vm0, %v3518_v26, 0.0  ;;  %2002 = vpow2.f32 %v1352_v33  ;;  %v1298_v60 = vsub.f32 %v3235_v14, %v3434_v16  ;;  %v4225_v14 = vld [vmem:[#allocation22_spill] sm:$0xff] }
 0x289   : > { %v3530_v62 = vpop.eup %1984  ;;  %v1427_v47 = vsel %vm4212_vm13, %v3524_v8, 0.0  ;;  %2004 = vpow2.f32 %v1354_v34  ;;  %v1370_v42 = vmul.f32 1.442695, %v1296_v10  ;;  %v1299_v12 = vsub.f32 %v3240_v0, %v3434_v16  ;;  %v4227_v0 = vld [vmem:[#allocation23_spill] sm:$0xff]  ;;  %vm4230_vm13 = vmmov %vm4162_vm0 }
 0x28a   : > { %v1422_v31 = vadd.f32 %v1421_v6, %v1420_v44  ;;  %v3536_v61 = vpop.eup %1986  ;;  %v1429_v6 = vsel %vm4213_vm1, %v3530_v62, 0.0  ;;  %2006 = vpow2.f32 %v1356_v35  ;;  %v1372_v9 = vmul.f32 1.442695, %v1297_v59  ;;  %vm4231_vm1 = vmmov %vm4162_vm0 }
 0x28b   : > { %v3542_v44 = vpop.eup %1988  ;;  %2008 = vpow2.f32 %v1358_v51  ;;  %v1300_v10 = vsub.f32 %v4225_v14, %v3434_v16  ;;  %v1301_v59 = vsub.f32 %v4227_v0, %v3434_v16  ;;  %v1388_v17 = vmul.f32 1.442695, %v1305_v19 }
 0x28c   : > { %v1424_v25 = vadd.f32 %v1423_v29, %v1422_v31  ;;  %v1431_v29 = vsel %vm4214_vm2, %v3536_v61, 0.0  ;;  %v3548_v31 = vpop.eup %1990  ;;  %2010 = vpow2.f32 %v1360_v27  ;;  %vm4232_vm2 = vmmov %vm4162_vm0  ;;  %v1390_v2 = vmul.f32 1.442695, %v1306_v18 }
 0x28d   : > { %2012 = vpow2.f32 %v1362_v36  ;;  %v1392_v13 = vmul.f32 1.442695, %v1307_v21  ;;  %v4237_v63 = vsub.f32 %v3291_v41, %v3434_v16  ;;  %v4239_v40 = vsub.f32 %v3296_v43, %v3434_v16 }
 0x28e   : > { %v1426_v20 = vadd.f32 %v1425_v32, %v1424_v25  ;;  %v1433_v32 = vsel %vm4215_vm3, %v3542_v44, 0.0  ;;  %v3554_v25 = vpop.eup %1992  ;;  %2014 = vpow2.f32 %v1364_v28  ;;  %vm4233_vm3 = vmmov %vm4162_vm0  ;;  %v4241_v41 = vsub.f32 %v3301_v46, %v3434_v16 }
 0x28f   : > { %2016 = vpow2.f32 %v1366_v57  ;;  %v1374_v57 = vmul.f32 1.442695, %v1298_v60  ;;  %v1394_v18 = vmul.f32 1.442695, %v4237_v63  ;;  %v1396_v21 = vmul.f32 1.442695, %v4239_v40 }
 0x290   : > { %v1428_v39 = vadd.f32 %v1427_v47, %v1426_v20  ;;  %v1435_v47 = vsel %vm4216_vm4, %v3548_v31, 0.0  ;;  %v3560_v20 = vpop.eup %1994  ;;  %2018 = vpow2.f32 %v1368_v52  ;;  %v1376_v52 = vmul.f32 1.442695, %v1299_v12  ;;  %vm4234_vm4 = vmmov %vm4162_vm0 }
 0x291   : > { %2020 = vpow2.f32 %v1370_v42  ;;  %v4229_v42 = vld [vmem:[#allocation24_spill] sm:$0xff]  ;;  %v4243_v43 = vsub.f32 %v3306_v49, %v3434_v16  ;;  %v4245_v46 = vsub.f32 %v3311_v7, %v3434_v16  ;;  %v4247_v49 = vsub.f32 %v3316_v50, %v3434_v16 }
 0x292   : > { %v1430_v30 = vadd.f32 %v1429_v6, %v1428_v39  ;;  %v1437_v6 = vsel %vm4217_vm5, %v3554_v25, 0.0  ;;  %v3566_v39 = vpop.eup %1996  ;;  %2022 = vpow2.f32 %v1372_v9  ;;  %v1302_v60 = vsub.f32 %v4229_v42, %v3434_v16  ;;  %vm4235_vm5 = vmmov %vm4162_vm0 }
 0x293   : > { %2024 = vpow2.f32 %v1374_v57  ;;  %v1380_v9 = vmul.f32 1.442695, %v1301_v59  ;;  %v4249_v7 = vsub.f32 %v3321_v53, %v3434_v16  ;;  %v4251_v50 = vsub.f32 %v3326_v54, %v3434_v16 }
 0x294   : > { %v1432_v24 = vadd.f32 %v1431_v29, %v1430_v30  ;;  %v1439_v29 = vsel %vm4218_vm6, %v3560_v20, 0.0  ;;  %v3572_v30 = vpop.eup %1998  ;;  %2026 = vpow2.f32 %v1376_v52  ;;  %v1382_v0 = vmul.f32 1.442695, %v1302_v60  ;;  %vm4236_vm6 = vmmov %vm4162_vm0 }
 0x295   : > { %v4253_v53 = vsub.f32 %v3331_v56, %v3434_v16  ;;  %v4254_v54 = vsub.f32 %v3336_v58, %v3434_v16 }
 0x296   : > { %v1434_v15 = vadd.f32 %v1433_v32, %v1432_v24  ;;  %v1441_v32 = vsel %vm4219_vm7, %v3566_v39, 0.0  ;;  %v3578_v24 = vpop.eup %2000  ;;  %vm4238_vm7 = vmmov %vm4162_vm0 }
 0x298   : > { %v1436_v33 = vadd.f32 %v1435_v47, %v1434_v15  ;;  %v1443_v47 = vsel %vm4220_vm8, %v3572_v30, 0.0  ;;  %v3584_v15 = vpop.eup %2002  ;;  %vm4240_vm8 = vmmov %vm4162_vm0 }
 0x29a   : > { %v1438_v34 = vadd.f32 %v1437_v6, %v1436_v33  ;;  %v1445_v6 = vsel %vm4221_vm9, %v3578_v24, 0.0  ;;  %v3590_v33 = vpop.eup %2004  ;;  %vm4242_vm9 = vmmov %vm4162_vm0 }
 0x29c   : > { %v1440_v35 = vadd.f32 %v1439_v29, %v1438_v34  ;;  %v1447_v29 = vsel %vm4222_vm15, %v3584_v15, 0.0  ;;  %v3596_v34 = vpop.eup %2006  ;;  %vm4244_vm15 = vmmov %vm4162_vm0 }
 0x29e   : > { %v1442_v51 = vadd.f32 %v1441_v32, %v1440_v35  ;;  %v1449_v32 = vsel %vm4223_vm11, %v3590_v33, 0.0  ;;  %v3602_v35 = vpop.eup %2008  ;;  %vm4246_vm11 = vmmov %vm4162_vm0 }
 0x2a0   : > { %v1444_v27 = vadd.f32 %v1443_v47, %v1442_v51  ;;  %v1451_v47 = vsel %vm4224_vm14, %v3596_v34, 0.0  ;;  %v3608_v51 = vpop.eup %2010  ;;  %vm4248_vm14 = vmmov %vm4162_vm0 }
 0x2a1   : > { %v3614_v37 = vpop.eup %2012 }
 0x2a2   : > { %v1446_v36 = vadd.f32 %v1445_v6, %v1444_v27  ;;  %v1453_v27 = vsel %vm4226_vm10, %v3602_v35, 0.0  ;;  %v3620_v4 = vpop.eup %2014  ;;  %v1457_v14 = vsel %vm4162_vm0, %v3614_v37, 0.0  ;;  %vm4250_vm10 = vmmov %vm4162_vm0 }
 0x2a3   : > { %v3626_v23 = vpop.eup %2016 }
 0x2a4   : > { %v1448_v28 = vadd.f32 %v1447_v29, %v1446_v36  ;;  %v1455_v36 = vsel %vm4228_vm12, %v3608_v51, 0.0  ;;  %vm4252_vm12 = vmmov %vm4162_vm0 }
 0x2a6   : > { %v1450_v6 = vadd.f32 %v1449_v32, %v1448_v28  ;;  %v1378_v32 = vmul.f32 1.442695, %v1300_v10  ;;  %v1461_v10 = vsel %vm4231_vm1, %v3626_v23, 0.0  ;;  %vm4256_vm1 = vmmov %vm4162_vm0 }
 0x2a8   : > { %v1452_v29 = vadd.f32 %v1451_v47, %v1450_v6  ;;  %v1459_v47 = vsel %vm4230_vm13, %v3620_v4, 0.0  ;;  %v3630_v6 = vpop.eup %2018  ;;  %2028 = vpow2.f32 %v1378_v32  ;;  %vm4255_vm13 = vmmov %vm4162_vm0 }
 0x2a9   : > { %v3634_v57 = vpop.eup %2020  ;;  %2030 = vpow2.f32 %v1380_v9  ;;  %v1463_v52 = vsel %vm4232_vm2, %v3630_v6, 0.0  ;;  %vm4257_vm2 = vmmov %vm4162_vm0 }
 0x2aa   : > { %v1454_v28 = vadd.f32 %v1453_v27, %v1452_v29  ;;  %v1384_v27 = vmul.f32 1.442695, %v1303_v3  ;;  %v3641_v29 = vpop.eup %2022  ;;  %2032 = vpow2.f32 %v1382_v0  ;;  %v1465_v60 = vsel %vm4233_vm3, %v3634_v57, 0.0  ;;  %vm4258_vm3 = vmmov %vm4162_vm0 }
 0x2ab   : > { %v3648_v32 = vpop.eup %2024 }
 0x2ac   : > { %v1456_v12 = vadd.f32 %v1455_v36, %v1454_v28  ;;  %v1386_v36 = vmul.f32 1.442695, %v1304_v55  ;;  %2034 = vpow2.f32 %v1384_v27  ;;  %v3655_v28 = vpop.eup %2026 }
 0x2ae   : > { %v1458_v22 = vadd.f32 %v1457_v14, %v1456_v12  ;;  %2036 = vpow2.f32 %v1386_v36  ;;  %v1469_v14 = vsel %vm4235_vm5, %v3648_v32, 0.0  ;;  %v1471_v12 = vsel %vm4236_vm6, %v3655_v28, 0.0  ;;  %vm4260_vm5 = vmmov %vm4162_vm0 }
 0x2af   : > { %2038 = vpow2.f32 %v1388_v17  ;;  %vm4261_vm6 = vmmov %vm4162_vm0 }
 0x2b0   : > { %v1460_v59 = vadd.f32 %v1459_v47, %v1458_v22  ;;  %v1467_v22 = vsel %vm4234_vm4, %v3641_v29, 0.0  ;;  %2040 = vpow2.f32 %v1390_v2  ;;  %vm4259_vm4 = vmmov %vm4162_vm0 }
 0x2b1   : > { %2042 = vpow2.f32 %v1392_v13  ;;  %v1402_v13 = vmul.f32 1.442695, %v4245_v46 }
 0x2b2   : > { %v1462_v42 = vadd.f32 %v1461_v10, %v1460_v59  ;;  %v3662_v9 = vpop.eup %2028  ;;  %2044 = vpow2.f32 %v1394_v18  ;;  %v1404_v18 = vmul.f32 1.442695, %v4247_v49 }
 0x2b3   : > { %v3669_v47 = vpop.eup %2030  ;;  %v1473_v10 = vsel %vm4238_vm7, %v3662_v9, 0.0  ;;  %2046 = vpow2.f32 %v1396_v21  ;;  %v1406_v21 = vmul.f32 1.442695, %v4249_v7  ;;  %vm4262_vm7 = vmmov %vm4162_vm0 }
 0x2b4   : > { %v1464_v3 = vadd.f32 %v1463_v52, %v1462_v42  ;;  %v3676_v27 = vpop.eup %2032  ;;  %v1475_v52 = vsel %vm4240_vm8, %v3669_v47, 0.0  ;;  %v1398_v42 = vmul.f32 1.442695, %v4241_v41  ;;  %vm4263_vm8 = vmmov %vm4162_vm0 }
 0x2b5   : > { %v1477_v17 = vsel %vm4242_vm9, %v3676_v27, 0.0  ;;  %vm4264_vm9 = vmmov %vm4162_vm0 }
 0x2b6   : > { %v1466_v55 = vadd.f32 %v1465_v60, %v1464_v3  ;;  %v3683_v36 = vpop.eup %2034  ;;  %2048 = vpow2.f32 %v1398_v42  ;;  %v1408_v42 = vmul.f32 1.442695, %v4251_v50 }
 0x2b8   : > { %v1468_v19 = vadd.f32 %v1467_v22, %v1466_v55  ;;  %v3690_v3 = vpop.eup %2036  ;;  %v1400_v22 = vmul.f32 1.442695, %v4243_v43  ;;  %v1479_v55 = vsel %vm4244_vm15, %v3683_v36, 0.0  ;;  %vm4265_vm15 = vmmov %vm4162_vm0 }
 0x2ba   : > { %v1470_v0 = vadd.f32 %v1469_v14, %v1468_v19  ;;  %v3697_v14 = vpop.eup %2038  ;;  %2050 = vpow2.f32 %v1400_v22  ;;  %v1410_v22 = vmul.f32 1.442695, %v4253_v53 }
 0x2bb   : > { %v3704_v63 = vpop.eup %2040  ;;  %2052 = vpow2.f32 %v1402_v13  ;;  %v1412_v13 = vmul.f32 1.442695, %v4254_v54 }
 0x2bc   : > { %v1472_v59 = vadd.f32 %v1471_v12, %v1470_v0  ;;  %v1481_v12 = vsel %vm4246_vm11, %v3690_v3, 0.0  ;;  %v3711_v40 = vpop.eup %2042  ;;  %2054 = vpow2.f32 %v1404_v18  ;;  %vm4266_vm11 = vmmov %vm4162_vm0 }
 0x2bd   : > { %v3718_v41 = vpop.eup %2044  ;;  %2056 = vpow2.f32 %v1406_v21 }
 0x2be   : > { %v1474_v60 = vadd.f32 %v1473_v10, %v1472_v59  ;;  %v1483_v10 = vsel %vm4248_vm14, %v3697_v14, 0.0  ;;  %v3725_v43 = vpop.eup %2046  ;;  %2058 = vpow2.f32 %v1408_v42  ;;  %vm4267_vm14 = vmmov %vm4162_vm0 }
 0x2bf   : > { %2060 = vpow2.f32 %v1410_v22 }
 0x2c0   : > { %v1476_v2 = vadd.f32 %v1475_v52, %v1474_v60  ;;  %v1485_v52 = vsel %vm4250_vm10, %v3704_v63, 0.0  ;;  %v3732_v46 = vpop.eup %2048  ;;  %2062 = vpow2.f32 %v1412_v13  ;;  %vm4268_vm10 = vmmov %vm4162_vm0 }
 0x2c1   : > { %v1493_v18 = vsel %vm4256_vm1, %v3732_v46, 0.0  ;;  %vm4271_vm1 = vmmov %vm4162_vm0 }
 0x2c2   : > { %v1478_v19 = vadd.f32 %v1477_v17, %v1476_v2  ;;  %v1487_v17 = vsel %vm4252_vm12, %v3711_v40, 0.0  ;;  %vm4269_vm12 = vmmov %vm4162_vm0 }
 0x2c4   : > { %v1480_v0 = vadd.f32 %v1479_v55, %v1478_v19  ;;  %v1489_v55 = vsel %vm4162_vm0, %v3718_v41, 0.0  ;;  %v3739_v49 = vpop.eup %2050 }
 0x2c5   : > { %v1495_v7 = vsel %vm4257_vm2, %v3739_v49, 0.0  ;;  %vm4272_vm2 = vmmov %vm4162_vm0 }
 0x2c6   : > { %v1482_v59 = vadd.f32 %v1481_v12, %v1480_v0  ;;  %v1491_v12 = vsel %vm4255_vm13, %v3725_v43, 0.0  ;;  %v3743_v0 = vpop.eup %2052  ;;  %vm4270_vm13 = vmmov %vm4162_vm0 }
 0x2c7   : > { %v3747_v16 = vpop.eup %2054  ;;  %v1497_v21 = vsel %vm4258_vm3, %v3743_v0, 0.0  ;;  %vm4273_vm3 = vmmov %vm4162_vm0 }
 0x2c8   : > { %v1484_v60 = vadd.f32 %v1483_v10, %v1482_v59  ;;  %v3751_v59 = vpop.eup %2056  ;;  %v1499_v50 = vsel %vm4259_vm4, %v3747_v16, 0.0  ;;  %vm4274_vm4 = vmmov %vm4162_vm0 }
 0x2c9   : > { %v3755_v42 = vpop.eup %2058 }
 0x2ca   : > { %v1486_v2 = vadd.f32 %v1485_v52, %v1484_v60  ;;  %v3759_v53 = vpop.eup %2060 }
 0x2cb   : > { %v1505_v13 = vsel %vm4262_vm7, %v3759_v53, 0.0  ;;  %vm4277_vm7 = vmmov %vm4162_vm0 }
 0x2cc   : > { %v1488_v19 = vadd.f32 %v1487_v17, %v1486_v2  ;;  %v1501_v17 = vsel %vm4260_vm5, %v3751_v59, 0.0  ;;  %v1503_v2 = vsel %vm4261_vm6, %v3755_v42, 0.0  ;;  %vm4275_vm5 = vmmov %vm4162_vm0 }
 0x2cd   : > { %vm4276_vm6 = vmmov %vm4162_vm0 }
 0x2ce   : > { %v1490_v56 = vadd.f32 %v1489_v55, %v1488_v19  ;;  %v3763_v55 = vpop.eup %2062 }
 0x2d0   : > { %v1492_v10 = vadd.f32 %v1491_v12, %v1490_v56  ;;  %v1507_v12 = vsel %vm4263_vm8, %v3763_v55, 0.0  ;;  %vm4278_vm8 = vmmov %vm4162_vm0 }
 0x2d2   : > { %v1494_v58 = vadd.f32 %v1493_v18, %v1492_v10 }
 0x2d4   : > { %v1496_v52 = vadd.f32 %v1495_v7, %v1494_v58 }
 0x2d6   : > { %v1498_v60 = vadd.f32 %v1497_v21, %v1496_v52 }
 0x2d8   : > { %v1500_v22 = vadd.f32 %v1499_v50, %v1498_v60 }
 0x2da   : > { %v1502_v54 = vadd.f32 %v1501_v17, %v1500_v22 }
 0x2dc   : > { %v1504_v19 = vadd.f32 %v1503_v2, %v1502_v54 }
 0x2de   : > { %v1506_v56 = vadd.f32 %v1505_v13, %v1504_v19 }
 0x2e0   : > { %v1508_v18 = vadd.f32 %v1507_v12, %v1506_v56 }
 0x2e2   : > { %v1509_v10 = vrot.slane %v1508_v18, 4 }
 0x2e4   : > { %v1510_v7 = vadd.f32 %v1509_v10, %v1508_v18 }
 0x2e6   : > { %v1511_v58 = vrot.slane %v1510_v7, 2 }
 0x2e8   : > { %v1512_v21 = vadd.f32 %v1511_v58, %v1510_v7 }
 0x2ea   : > { %v1513_v52 = vrot.slane %v1512_v21, 1 }
 0x2ec   : > { %v1514_v50 = vadd.f32 %v1513_v52, %v1512_v21 }
 0x2ee   : > { %2064 = vrcp.f32 %v1514_v50 }
 0x2f8   : > { %v3769_v60 = vpop.eup %2064 }
 0x2f9   : > { %v1516_v17 = vmul.f32 %v3769_v60, %v3488_v38  ;;  %v1517_v22 = vmul.f32 %v3769_v60, %v3490_v5  ;;  %v1518_v2 = vmul.f32 %v3769_v60, %v3494_v45  ;;  %v1519_v54 = vmul.f32 %v3769_v60, %v3496_v48 }
 0x2fa   : > { %v1520_v13 = vmul.f32 %v3769_v60, %v3506_v11  ;;  %v1521_v19 = vmul.f32 %v3769_v60, %v3512_v1  ;;  %v1522_v12 = vmul.f32 %v3769_v60, %v3518_v26  ;;  %v1523_v38 = vmul.f32 %v3769_v60, %v3524_v8 }
 0x2fb   : > { %1564 = vst.msk [vmem:[%s4068_s6] sm:$0xff] %vm4264_vm9, %v1516_v17  ;;  %v1524_v5 = vmul.f32 %v3769_v60, %v3530_v62  ;;  %v1525_v45 = vmul.f32 %v3769_v60, %v3536_v61  ;;  %v1526_v48 = vmul.f32 %v3769_v60, %v3542_v44  ;;  %v1527_v11 = vmul.f32 %v3769_v60, %v3548_v31  ;;  %vm4279_vm9 = vmmov %vm4162_vm0 }
 0x2fc   : > { %1565 = vst.msk [vmem:[%s4068_s6 + $0x8] sm:$0xff] %vm4265_vm15, %v1517_v22  ;;  %v1528_v1 = vmul.f32 %v3769_v60, %v3554_v25  ;;  %v1529_v26 = vmul.f32 %v3769_v60, %v3560_v20  ;;  %v1530_v8 = vmul.f32 %v3769_v60, %v3566_v39  ;;  %v1531_v62 = vmul.f32 %v3769_v60, %v3572_v30  ;;  %vm4280_vm15 = vmmov %vm4162_vm0 }
 0x2fd   : > { %1566 = vst.msk [vmem:[%s4068_s6 + $0x10] sm:$0xff] %vm4266_vm11, %v1518_v2  ;;  %v1532_v61 = vmul.f32 %v3769_v60, %v3578_v24  ;;  %v1533_v44 = vmul.f32 %v3769_v60, %v3584_v15  ;;  %v1534_v31 = vmul.f32 %v3769_v60, %v3590_v33  ;;  %v1535_v25 = vmul.f32 %v3769_v60, %v3596_v34  ;;  %vm4281_vm11 = vmmov %vm4162_vm0 }
 0x2fe   : > { %1567 = vst.msk [vmem:[%s4068_s6 + $0x18] sm:$0xff] %vm4267_vm14, %v1519_v54  ;;  %v1536_v20 = vmul.f32 %v3769_v60, %v3602_v35  ;;  %v1537_v39 = vmul.f32 %v3769_v60, %v3608_v51  ;;  %v1538_v30 = vmul.f32 %v3769_v60, %v3614_v37  ;;  %v1539_v24 = vmul.f32 %v3769_v60, %v3620_v4  ;;  %vm4282_vm14 = vmmov %vm4162_vm0 }
 0x2ff   : > { %1568 = vst.msk [vmem:[%s4068_s6 + $0x20] sm:$0xff] %vm4268_vm10, %v1520_v13  ;;  %v1540_v4 = vmul.f32 %v3769_v60, %v3626_v23  ;;  %v1541_v37 = vmul.f32 %v3769_v60, %v3630_v6  ;;  %v1542_v15 = vmul.f32 %v3769_v60, %v3634_v57  ;;  %v1543_v33 = vmul.f32 %v3769_v60, %v3641_v29  ;;  %vm4283_vm10 = vmmov %vm4162_vm0 }
 0x300   : > { %1569 = vst.msk [vmem:[%s4068_s6 + $0x28] sm:$0xff] %vm4269_vm12, %v1521_v19  ;;  %vm4284_vm12 = vmmov %vm4162_vm0  ;;  %v1544_v23 = vmul.f32 %v3769_v60, %v3648_v32  ;;  %v1545_v34 = vmul.f32 %v3769_v60, %v3655_v28  ;;  %v1546_v35 = vmul.f32 %v3769_v60, %v3662_v9  ;;  %v1547_v51 = vmul.f32 %v3769_v60, %v3669_v47 }
 0x301   : > { %1570 = vst.msk [vmem:[%s4068_s6 + $0x30] sm:$0xff] %vm4162_vm0, %v1522_v12  ;;  %1586 = vst.msk [vmem:[%s4068_s6 + $0xb0] sm:$0xff] %vm4162_vm0, %v1538_v30  ;;  %v1548_v6 = vmul.f32 %v3769_v60, %v3676_v27  ;;  %v1549_v57 = vmul.f32 %v3769_v60, %v3683_v36  ;;  %v1550_v29 = vmul.f32 %v3769_v60, %v3690_v3 }
 0x302   : > { %1571 = vst.msk [vmem:[%s4068_s6 + $0x38] sm:$0xff] %vm4270_vm13, %v1523_v38  ;;  %vm4285_vm13 = vmmov %vm4162_vm0  ;;  %v1551_v32 = vmul.f32 %v3769_v60, %v3697_v14  ;;  %v1552_v28 = vmul.f32 %v3769_v60, %v3704_v63  ;;  %v1553_v9 = vmul.f32 %v3769_v60, %v3711_v40  ;;  %v1554_v47 = vmul.f32 %v3769_v60, %v3718_v41 }
 0x303   : > { %1572 = vst.msk [vmem:[%s4068_s6 + $0x40] sm:$0xff] %vm4271_vm1, %v1524_v5  ;;  %vm4286_vm1 = vmmov %vm4162_vm0  ;;  %v1555_v27 = vmul.f32 %v3769_v60, %v3725_v43  ;;  %v1556_v36 = vmul.f32 %v3769_v60, %v3732_v46  ;;  %v1557_v3 = vmul.f32 %v3769_v60, %v3739_v49  ;;  %v1558_v14 = vmul.f32 %v3769_v60, %v3743_v0 }
 0x304   : > { %1573 = vst.msk [vmem:[%s4068_s6 + $0x48] sm:$0xff] %vm4272_vm2, %v1525_v45  ;;  %vm4287_vm2 = vmmov %vm4162_vm0  ;;  %v1559_v63 = vmul.f32 %v3769_v60, %v3747_v16  ;;  %v1560_v40 = vmul.f32 %v3769_v60, %v3751_v59  ;;  %v1561_v41 = vmul.f32 %v3769_v60, %v3755_v42  ;;  %v1562_v43 = vmul.f32 %v3769_v60, %v3759_v53 }
 0x305   : > { %1574 = vst.msk [vmem:[%s4068_s6 + $0x50] sm:$0xff] %vm4273_vm3, %v1526_v48  ;;  %vm4288_vm3 = vmmov %vm4162_vm0  ;;  %v1563_v46 = vmul.f32 %v3769_v60, %v3763_v55 }
 0x306   : > { %1575 = vst.msk [vmem:[%s4068_s6 + $0x58] sm:$0xff] %vm4274_vm4, %v1527_v11  ;;  %vm4289_vm4 = vmmov %vm4162_vm0 }
 0x307   : > { %1576 = vst.msk [vmem:[%s4068_s6 + $0x60] sm:$0xff] %vm4275_vm5, %v1528_v1  ;;  %vm4290_vm5 = vmmov %vm4162_vm0 }
 0x308   : > { %1577 = vst.msk [vmem:[%s4068_s6 + $0x68] sm:$0xff] %vm4276_vm6, %v1529_v26  ;;  %vm4291_vm6 = vmmov %vm4162_vm0 }
 0x309   : > { %1578 = vst.msk [vmem:[%s4068_s6 + $0x70] sm:$0xff] %vm4277_vm7, %v1530_v8  ;;  %vm4292_vm7 = vmmov %vm4162_vm0 }
 0x30a   : > { %1579 = vst.msk [vmem:[%s4068_s6 + $0x78] sm:$0xff] %vm4278_vm8, %v1531_v62  ;;  %vm4293_vm8 = vmmov %vm4162_vm0 }
 0x30b   : > { %1580 = vst.msk [vmem:[%s4068_s6 + $0x80] sm:$0xff] %vm4279_vm9, %v1532_v61  ;;  %vm4294_vm9 = vmmov %vm4162_vm0 }
 0x30c   : > { %1581 = vst.msk [vmem:[%s4068_s6 + $0x88] sm:$0xff] %vm4280_vm15, %v1533_v44  ;;  %vm4295_vm15 = vmmov %vm4162_vm0 }
 0x30d   : > { %1582 = vst.msk [vmem:[%s4068_s6 + $0x90] sm:$0xff] %vm4281_vm11, %v1534_v31  ;;  %vm4296_vm11 = vmmov %vm4162_vm0 }
 0x30e   : > { %1583 = vst.msk [vmem:[%s4068_s6 + $0x98] sm:$0xff] %vm4282_vm14, %v1535_v25  ;;  %vm4297_vm14 = vmmov %vm4162_vm0 }
 0x30f   : > { %1584 = vst.msk [vmem:[%s4068_s6 + $0xa0] sm:$0xff] %vm4283_vm10, %v1536_v20  ;;  %vm4298_vm10 = vmmov %vm4162_vm0 }
 0x310   : > { %1585 = vst.msk [vmem:[%s4068_s6 + $0xa8] sm:$0xff] %vm4284_vm12, %v1537_v39  ;;  %vm4299_vm12 = vmmov %vm4162_vm0 }
 0x311   : > { %1587 = vst.msk [vmem:[%s4068_s6 + $0xb8] sm:$0xff] %vm4285_vm13, %v1539_v24  ;;  %vm4300_vm13 = vmmov %vm4162_vm0 }
 0x312   : > { %1588 = vst.msk [vmem:[%s4068_s6 + $0xc0] sm:$0xff] %vm4286_vm1, %v1540_v4  ;;  %vm4301_vm1 = vmmov %vm4162_vm0 }
 0x313   : > { %1589 = vst.msk [vmem:[%s4068_s6 + $0xc8] sm:$0xff] %vm4287_vm2, %v1541_v37  ;;  %vm4302_vm2 = vmmov %vm4162_vm0 }
 0x314   : > { %1590 = vst.msk [vmem:[%s4068_s6 + $0xd0] sm:$0xff] %vm4288_vm3, %v1542_v15  ;;  %vm4303_vm3 = vmmov %vm4162_vm0 }
 0x315   : > { %1591 = vst.msk [vmem:[%s4068_s6 + $0xd8] sm:$0xff] %vm4289_vm4, %v1543_v33  ;;  %vm4304_vm4 = vmmov %vm4162_vm0 }
 0x316   : > { %1592 = vst.msk [vmem:[%s4068_s6 + $0xe0] sm:$0xff] %vm4290_vm5, %v1544_v23  ;;  %vm4305_vm5 = vmmov %vm4162_vm0 }
 0x317   : > { %1593 = vst.msk [vmem:[%s4068_s6 + $0xe8] sm:$0xff] %vm4291_vm6, %v1545_v34  ;;  %vm4306_vm6 = vmmov %vm4162_vm0 }
 0x318   : > { %1594 = vst.msk [vmem:[%s4068_s6 + $0xf0] sm:$0xff] %vm4292_vm7, %v1546_v35  ;;  %vm4307_vm7 = vmmov %vm4162_vm0 }
 0x319   : > { %1595 = vst.msk [vmem:[%s4068_s6 + $0xf8] sm:$0xff] %vm4293_vm8, %v1547_v51  ;;  %vm4308_vm8 = vmmov %vm4162_vm0 }
 0x31a   : > { %1596 = vst.msk [vmem:[%s4068_s6 + $0x100] sm:$0xff] %vm4294_vm9, %v1548_v6 }
 0x31b   : > { %1597 = vst.msk [vmem:[%s4068_s6 + $0x108] sm:$0xff] %vm4295_vm15, %v1549_v57 }
 0x31c   : > { %1598 = vst.msk [vmem:[%s4068_s6 + $0x110] sm:$0xff] %vm4296_vm11, %v1550_v29 }
 0x31d   : > { %1599 = vst.msk [vmem:[%s4068_s6 + $0x118] sm:$0xff] %vm4297_vm14, %v1551_v32 }
 0x31e   : > { %1600 = vst.msk [vmem:[%s4068_s6 + $0x120] sm:$0xff] %vm4298_vm10, %v1552_v28 }
 0x31f   : > { %1601 = vst.msk [vmem:[%s4068_s6 + $0x128] sm:$0xff] %vm4299_vm12, %v1553_v9 }
 0x320   : > { %1602 = vst.msk [vmem:[%s4068_s6 + $0x130] sm:$0xff] %vm4162_vm0, %v1554_v47 }
 0x321   : > { %1603 = vst.msk [vmem:[%s4068_s6 + $0x138] sm:$0xff] %vm4300_vm13, %v1555_v27 }
 0x322   : > { %1604 = vst.msk [vmem:[%s4068_s6 + $0x140] sm:$0xff] %vm4301_vm1, %v1556_v36 }
 0x323   : > { %1605 = vst.msk [vmem:[%s4068_s6 + $0x148] sm:$0xff] %vm4302_vm2, %v1557_v3 }
 0x324   : > { %1606 = vst.msk [vmem:[%s4068_s6 + $0x150] sm:$0xff] %vm4303_vm3, %v1558_v14 }
 0x325   : > { %1607 = vst.msk [vmem:[%s4068_s6 + $0x158] sm:$0xff] %vm4304_vm4, %v1559_v63 }
 0x326   : > { %1608 = vst.msk [vmem:[%s4068_s6 + $0x160] sm:$0xff] %vm4305_vm5, %v1560_v40 }
 0x327   : > { %1609 = vst.msk [vmem:[%s4068_s6 + $0x168] sm:$0xff] %vm4306_vm6, %v1561_v41 }
 0x328   : > { %1610 = vst.msk [vmem:[%s4068_s6 + $0x170] sm:$0xff] %vm4307_vm7, %v1562_v43 }
 0x329   : > { %1611 = vst.msk [vmem:[%s4068_s6 + $0x178] sm:$0xff] %vm4308_vm8, %v1563_v46 }
 0x32a PF: > { %s19_s25 = sadd.s32 1, %s2072_s25  }
 0x32b   : > { %p16_p5 = scmp.ge.s32.totalorder %s19_s25, 5  }
 0x32d   :  { %18 = sbr.rel (!%p16_p5) target bundleno = 3 (0x3), region = 71 }

</bundles_post_ra>
